<compile_context>
chip_gen: v7x
topology: tpu7x:2x2x1
jax: 0.10.0
libtpu: 0.0.40
codegen_flags: <defaults>
</compile_context>

<pallas_src>
import functools
import math

import jax
import jax.numpy as jnp
from jax.experimental import pallas as pl
from jax.experimental.pallas import tpu as pltpu

IN_CH = 1
BASE = 4            # channel width (PyTorch default is 64; scaled down for the test)
NUM_CLASSES = 2
SPATIAL = 188       # architectural minimum for 4 levels of valid convs + pools
BATCH = 2

_PAR1 = pltpu.CompilerParams(dimension_semantics=("parallel",))


# --------------------------------------------------------------------------
# in-kernel building blocks (operate on Refs; shared by fused kernels)
# --------------------------------------------------------------------------
def _pick_rows(hout, wout):
    """Output rows computed per matmul: keeps the MXU N-dim (rows*wout) large."""
    if hout <= 16:
        return hout
    return int(max(1, min(16, pl.cdiv(512, wout))))


def _conv3x3_body(x_ref, w_ref, b_ref, o_ref, rows, relu):
    """Valid 3x3 conv: x_ref (H, Cin, W) -> o_ref (H-2, Cout, W-2).

    Folded-tap formulation: per group of `rows` output rows, one MXU matmul
    (Cout, 9*Cin) x (9*Cin, rows*Wout); the group rows are statically unrolled.
    """
    hout, cout, wout = o_ref.shape
    wmat = w_ref[...]                     # (Cout, 9*Cin)   [K = 9*Cin, not Cin]
    bias = b_ref[...]                     # (Cout, 1) - added once per group

    def compute(xg):                      # xg: (rows+2, Cin, W)
        cols = []
        for r in range(rows):             # fixed unroll factor = rows
            taps = [xg[r + dy, :, dx:dx + wout]
                    for dy in range(3) for dx in range(3)]     # 9 x (Cin, Wout)
            cols.append(jnp.concatenate(taps, axis=0))          # (9*Cin, Wout)
        patch = cols[0] if rows == 1 else jnp.concatenate(cols, axis=1)
        acc = jnp.dot(wmat, patch, preferred_element_type=jnp.float32) + bias
        if relu:
            acc = jnp.maximum(acc, 0.0)
        return acc.astype(o_ref.dtype)    # (Cout, rows*Wout)

    n_groups = pl.cdiv(hout, rows)
    if n_groups == 1:                     # fully static path (deep levels)
        acc = compute(x_ref[...])
        for r in range(rows):
            o_ref[r] = acc[:, r * wout:(r + 1) * wout]
    else:
        def body(g, carry):
            # last group overlaps the previous one (re-writes identical rows)
            i = jnp.minimum(g * rows, hout - rows)
            acc = compute(x_ref[pl.ds(i, rows + 2)])
            for r in range(rows):
                o_ref[i + r] = acc[:, r * wout:(r + 1) * wout]
            return carry
        jax.lax.fori_loop(0, n_groups, body, 0)


def _relu_pool_body(x_ref, o_ref):
    """out = maxpool2x2(relu(x)).  x_ref (H, C, W) -> o_ref (H//2, C, W//2).

    Column de-interleave uses exact 0/1 selection matrices on the MXU
    (selection matmuls are exact: one nonzero term per output element).
    """
    ho, c, wo = o_ref.shape
    win = x_ref.shape[2]
    k_idx = jax.lax.broadcasted_iota(jnp.int32, (win, wo), 0)
    j_idx = jax.lax.broadcasted_iota(jnp.int32, (win, wo), 1)
    s_even = (k_idx == 2 * j_idx).astype(x_ref.dtype)          # picks columns 2j
    s_odd = (k_idx == 2 * j_idx + 1).astype(x_ref.dtype)       # picks columns 2j+1

    def body(i, carry):
        m = jnp.maximum(jnp.maximum(x_ref[2 * i], x_ref[2 * i + 1]), 0.0)  # (C, W)
        left = jnp.dot(m, s_even, preferred_element_type=jnp.float32)
        right = jnp.dot(m, s_odd, preferred_element_type=jnp.float32)
        o_ref[i] = jnp.maximum(left, right).astype(o_ref.dtype)
        return carry

    jax.lax.fori_loop(0, ho, body, 0)


# --------------------------------------------------------------------------
# fused kernels
# --------------------------------------------------------------------------
def _encoder_level_kernel(x_ref, w1_ref, b1_ref, w2_ref, b2_ref,
                          skip_ref, pool_ref, t1_ref, t2_ref,
                          *, r1, r2, crop_oh, crop_ow):
    """conv3x3 -> conv3x3 (VMEM) ; skip = center-crop(conv2) ; pool = maxpool(relu(conv2))."""
    _conv3x3_body(x_ref, w1_ref, b1_ref, t1_ref, r1, False)
    _conv3x3_body(t1_ref, w2_ref, b2_ref, t2_ref, r2, False)
    ch, _, cw = skip_ref.shape
    # The decoder only consumes this center window of the (pre-ReLU) activation.
    skip_ref[...] = t2_ref[crop_oh:crop_oh + ch, :, crop_ow:crop_ow + cw]
    _relu_pool_body(t2_ref, pool_ref)


def _double_conv_kernel(x_ref, w1_ref, b1_ref, w2_ref, b2_ref, o_ref, t_ref,
                        *, r1, r2, relu_last):
    """conv3x3 -> conv3x3 (+ optional trailing ReLU), intermediate in VMEM."""
    _conv3x3_body(x_ref, w1_ref, b1_ref, t_ref, r1, False)
    _conv3x3_body(t_ref, w2_ref, b2_ref, o_ref, r2, relu_last)


def _conv_transpose2x2_kernel(x_ref, w_ref, b_ref, o_ref):
    """ConvTranspose2d(k=2, s=2): x_ref (H, Cin, W) -> o_ref (2H, Cout, 2W).

    One matmul per input row computes all 4 sub-positions; the dx interleave
    is done with exact 0/1 expansion matrices (no XLA epilogue transpose).
    """
    h, cin, win = x_ref.shape
    cout = b_ref.shape[0]
    wmat = w_ref[...]                     # (4*Cout, Cin), row = (2*dy+dx)*Cout + co
    bias = b_ref[...]                     # (Cout, 1)
    j_idx = jax.lax.broadcasted_iota(jnp.int32, (win, 2 * win), 0)
    c_idx = jax.lax.broadcasted_iota(jnp.int32, (win, 2 * win), 1)
    e0 = (c_idx == 2 * j_idx).astype(x_ref.dtype)        # col j -> col 2j
    e1 = (c_idx == 2 * j_idx + 1).astype(x_ref.dtype)    # col j -> col 2j+1
    for i in range(h):                    # H is tiny (4) at every upsample stage
        y = jnp.dot(wmat, x_ref[i], preferred_element_type=jnp.float32)  # (4*Cout, W)
        for dy in range(2):
            y0 = y[(2 * dy) * cout:(2 * dy + 1) * cout]          # dx = 0
            y1 = y[(2 * dy + 1) * cout:(2 * dy + 2) * cout]      # dx = 1
            row = (jnp.dot(y0, e0, preferred_element_type=jnp.float32)
                   + jnp.dot(y1, e1, preferred_element_type=jnp.float32) + bias)
            o_ref[2 * i + dy] = row.astype(o_ref.dtype)


def _conv1x1_kernel(x_ref, w_ref, b_ref, o_ref):
    """1x1 conv on a tiny (4x4) map; statically unrolled rows."""
    h = x_ref.shape[0]
    wmat = w_ref[...]
    bias = b_ref[...]
    for i in range(h):
        o_ref[i] = (jnp.dot(wmat, x_ref[i], preferred_element_type=jnp.float32)
                    + bias).astype(o_ref.dtype)


def _conv3x3_standalone_kernel(x_ref, w_ref, b_ref, o_ref, *, rows, relu):
    _conv3x3_body(x_ref, w_ref, b_ref, o_ref, rows, relu)


# --------------------------------------------------------------------------
# weight folding + pallas_call wrappers   (activations are (N, H, C, W))
# --------------------------------------------------------------------------
def _fold_w3(w):
    # PyTorch Conv2d weight (Cout, Cin, 3, 3) -> (Cout, 9*Cin), col = (3*dy+dx)*Cin + ci
    cout, cin = w.shape[0], w.shape[1]
    return jnp.transpose(w, (0, 2, 3, 1)).reshape(cout, 9 * cin)


def _fold_wt(w):
    # PyTorch ConvTranspose2d weight (Cin, Cout, 2, 2) -> (4*Cout, Cin),
    # row = (2*dy+dx)*Cout + co
    cin, cout = w.shape[0], w.shape[1]
    return jnp.transpose(w, (2, 3, 1, 0)).reshape(4 * cout, cin)


def encoder_level(x, w1, b1, w2, b2, *, skip_size):
    """Fused encoder level.  x: (N, H, Cin, W).

    Returns (skip, pooled):
      skip   : (N, skip_size, Cout, skip_size)  center crop of the pre-ReLU
               double-conv output (exactly what the decoder concatenates)
      pooled : (N, (H-4)//2, Cout, (W-4)//2)
    """
    n, h, cin, win = x.shape
    cout = w1.shape[0]
    h1, wo1 = h - 2, win - 2
    h2, wo2 = h - 4, win - 4
    hp, wp = h2 // 2, wo2 // 2
    kernel = functools.partial(
        _encoder_level_kernel,
        r1=_pick_rows(h1, wo1), r2=_pick_rows(h2, wo2),
        crop_oh=(h2 - skip_size) // 2, crop_ow=(wo2 - skip_size) // 2)
    skip, pooled = pl.pallas_call(
        kernel,
        out_shape=(jax.ShapeDtypeStruct((n, skip_size, cout, skip_size), x.dtype),
                   jax.ShapeDtypeStruct((n, hp, cout, wp), x.dtype)),
        grid=(n,),
        in_specs=[
            pl.BlockSpec((None, h, cin, win), lambda i: (i, 0, 0, 0)),
            pl.BlockSpec((cout, 9 * cin), lambda i: (0, 0)),
            pl.BlockSpec((cout, 1), lambda i: (0, 0)),
            pl.BlockSpec((cout, 9 * cout), lambda i: (0, 0)),
            pl.BlockSpec((cout, 1), lambda i: (0, 0)),
        ],
        out_specs=(pl.BlockSpec((None, skip_size, cout, skip_size),
                                lambda i: (i, 0, 0, 0)),
                   pl.BlockSpec((None, hp, cout, wp), lambda i: (i, 0, 0, 0))),
        scratch_shapes=[pltpu.VMEM((h1, cout, wo1), x.dtype),
                        pltpu.VMEM((h2, cout, wo2), x.dtype)],
        compiler_params=_PAR1,
    )(x, _fold_w3(w1), b1.reshape(cout, 1), _fold_w3(w2), b2.reshape(cout, 1))
    return skip, pooled


def double_conv(x, w1, b1, w2, b2, *, relu_last):
    """Fused conv3x3 -> conv3x3 (+ optional ReLU).  x: (N, H, Cin, W)."""
    n, h, cin, win = x.shape
    cout = w1.shape[0]
    h1, wo1 = h - 2, win - 2
    h2, wo2 = h - 4, win - 4
    kernel = functools.partial(_double_conv_kernel,
                               r1=_pick_rows(h1, wo1), r2=_pick_rows(h2, wo2),
                               relu_last=relu_last)
    return pl.pallas_call(
        kernel,
        out_shape=jax.ShapeDtypeStruct((n, h2, cout, wo2), x.dtype),
        grid=(n,),
        in_specs=[
            pl.BlockSpec((None, h, cin, win), lambda i: (i, 0, 0, 0)),
            pl.BlockSpec((cout, 9 * cin), lambda i: (0, 0)),
            pl.BlockSpec((cout, 1), lambda i: (0, 0)),
            pl.BlockSpec((cout, 9 * cout), lambda i: (0, 0)),
            pl.BlockSpec((cout, 1), lambda i: (0, 0)),
        ],
        out_specs=pl.BlockSpec((None, h2, cout, wo2), lambda i: (i, 0, 0, 0)),
        scratch_shapes=[pltpu.VMEM((h1, cout, wo1), x.dtype)],
        compiler_params=_PAR1,
    )(x, _fold_w3(w1), b1.reshape(cout, 1), _fold_w3(w2), b2.reshape(cout, 1))


def conv_transpose2x2(x, w, b):
    """ConvTranspose2d(k=2, s=2).  x: (N, H, Cin, W), w: (Cin, Cout, 2, 2)."""
    n, h, cin, win = x.shape
    cout = w.shape[1]
    return pl.pallas_call(
        _conv_transpose2x2_kernel,
        out_shape=jax.ShapeDtypeStruct((n, 2 * h, cout, 2 * win), x.dtype),
        grid=(n,),
        in_specs=[
            pl.BlockSpec((None, h, cin, win), lambda i: (i, 0, 0, 0)),
            pl.BlockSpec((4 * cout, cin), lambda i: (0, 0)),
            pl.BlockSpec((cout, 1), lambda i: (0, 0)),
        ],
        out_specs=pl.BlockSpec((None, 2 * h, cout, 2 * win), lambda i: (i, 0, 0, 0)),
        compiler_params=_PAR1,
    )(x, _fold_wt(w), b.reshape(cout, 1))


def conv1x1(x, w, b):
    """1x1 conv.  x: (N, H, Cin, W), w: (Cout, Cin, 1, 1)."""
    n, h, cin, win = x.shape
    cout = w.shape[0]
    return pl.pallas_call(
        _conv1x1_kernel,
        out_shape=jax.ShapeDtypeStruct((n, h, cout, win), x.dtype),
        grid=(n,),
        in_specs=[
            pl.BlockSpec((None, h, cin, win), lambda i: (i, 0, 0, 0)),
            pl.BlockSpec((cout, cin), lambda i: (0, 0)),
            pl.BlockSpec((cout, 1), lambda i: (0, 0)),
        ],
        out_specs=pl.BlockSpec((None, h, cout, win), lambda i: (i, 0, 0, 0)),
        compiler_params=_PAR1,
    )(x, w.reshape(cout, cin), b.reshape(cout, 1))


def conv3x3(x, w, b, relu=False):
    """Standalone valid 3x3 conv (used by the self-test).  x: (N, H, Cin, W)."""
    n, h, cin, win = x.shape
    cout = w.shape[0]
    hout, wout = h - 2, win - 2
    kernel = functools.partial(_conv3x3_standalone_kernel,
                               rows=_pick_rows(hout, wout), relu=relu)
    return pl.pallas_call(
        kernel,
        out_shape=jax.ShapeDtypeStruct((n, hout, cout, wout), x.dtype),
        grid=(n,),
        in_specs=[
            pl.BlockSpec((None, h, cin, win), lambda i: (i, 0, 0, 0)),
            pl.BlockSpec((cout, 9 * cin), lambda i: (0, 0)),
            pl.BlockSpec((cout, 1), lambda i: (0, 0)),
        ],
        out_specs=pl.BlockSpec((None, hout, cout, wout), lambda i: (i, 0, 0, 0)),
        compiler_params=_PAR1,
    )(x, _fold_w3(w), b.reshape(cout, 1))


# --------------------------------------------------------------------------
# model glue
# --------------------------------------------------------------------------
def _decoder_crop_sizes(spatial):
    """Spatial size each encoder skip is center-cropped to (per level 1..4)."""
    s = spatial
    for _ in range(4):
        s = s - 4
        s = s // 2
    s = s - 4                      # bottleneck output
    crops = []
    for _ in range(4):
        s = 2 * s                  # upsample
        crops.append(s)
        s = s - 4                  # decoder double conv
    return crops[::-1]             # [level1, level2, level3, level4]


def _concat_skip(skip, up):
    # skip is already center-cropped; channel order matches torch.cat((crop, up), 1)
    assert skip.shape[1] == up.shape[1] and skip.shape[3] == up.shape[3]
    return jnp.concatenate([skip, up], axis=2)


def unet_forward(x_nchw, params):
    x = jnp.transpose(x_nchw, (0, 2, 1, 3))          # NCHW -> (N, H, C, W)
    crops = _decoder_crop_sizes(x.shape[1])

    c1, p1 = encoder_level(x, *params["conv1"], skip_size=crops[0])
    c2, p2 = encoder_level(p1, *params["conv2"], skip_size=crops[1])
    c3, p3 = encoder_level(p2, *params["conv3"], skip_size=crops[2])
    c4, p4 = encoder_level(p3, *params["conv4"], skip_size=crops[3])
    c5 = double_conv(p4, *params["conv5"], relu_last=False)

    u1 = conv_transpose2x2(c5, *params["up1"])
    d6 = double_conv(_concat_skip(c4, u1), *params["conv6"], relu_last=True)
    u2 = conv_transpose2x2(d6, *params["up2"])
    d7 = double_conv(_concat_skip(c3, u2), *params["conv7"], relu_last=True)
    u3 = conv_transpose2x2(d7, *params["up3"])
    d8 = double_conv(_concat_skip(c2, u3), *params["conv8"], relu_last=True)
    u4 = conv_transpose2x2(d8, *params["up4"])
    d9 = double_conv(_concat_skip(c1, u4), *params["conv9"], relu_last=True)

    out = conv1x1(d9, *params["conv10"])
    return jnp.transpose(out, (0, 2, 1, 3))          # (N, H, C, W) -> NCHW


def init_params(key):
    keys = iter(jax.random.split(key, 64))

    def conv3_p(cin, cout):
        w = jax.random.normal(next(keys), (cout, cin, 3, 3), jnp.float32) / math.sqrt(9 * cin)
        b = jax.random.normal(next(keys), (cout,), jnp.float32) * 0.05
        return w, b

    def convt_p(cin, cout):
        w = jax.random.normal(next(keys), (cin, cout, 2, 2), jnp.float32) / math.sqrt(4 * cin)
        b = jax.random.normal(next(keys), (cout,), jnp.float32) * 0.05
        return w, b

    def conv1_p(cin, cout):
        w = jax.random.normal(next(keys), (cout, cin, 1, 1), jnp.float32) / math.sqrt(cin)
        b = jax.random.normal(next(keys), (cout,), jnp.float32) * 0.05
        return w, b

    c = BASE
    p = {}
    p["conv1"] = (*conv3_p(IN_CH, c), *conv3_p(c, c))
    p["conv2"] = (*conv3_p(c, 2 * c), *conv3_p(2 * c, 2 * c))
    p["conv3"] = (*conv3_p(2 * c, 4 * c), *conv3_p(4 * c, 4 * c))
    p["conv4"] = (*conv3_p(4 * c, 8 * c), *conv3_p(8 * c, 8 * c))
    p["conv5"] = (*conv3_p(8 * c, 16 * c), *conv3_p(16 * c, 16 * c))
    p["up1"] = convt_p(16 * c, 8 * c)
    p["conv6"] = (*conv3_p(16 * c, 8 * c), *conv3_p(8 * c, 8 * c))
    p["up2"] = convt_p(8 * c, 4 * c)
    p["conv7"] = (*conv3_p(8 * c, 4 * c), *conv3_p(4 * c, 4 * c))
    p["up3"] = convt_p(4 * c, 2 * c)
    p["conv8"] = (*conv3_p(4 * c, 2 * c), *conv3_p(2 * c, 2 * c))
    p["up4"] = convt_p(2 * c, c)
    p["conv9"] = (*conv3_p(2 * c, c), *conv3_p(c, c))
    p["conv10"] = conv1_p(c, NUM_CLASSES)
    return p


# --------------------------------------------------------------------------
# pure-JAX reference (for correctness checks only)
# --------------------------------------------------------------------------
_HI = jax.lax.Precision.HIGHEST


def _conv_ref(x, w, b):
    y = jax.lax.conv_general_dilated(x, w, (1, 1), "VALID",
                                     dimension_numbers=("NCHW", "OIHW", "NCHW"),
                                     precision=_HI)
    return y + b[None, :, None, None]


def _pool_ref(x):
    return jax.lax.reduce_window(x, -jnp.inf, jax.lax.max,
                                 (1, 1, 2, 2), (1, 1, 2, 2), "VALID")


def _convt_ref(x, w, b):
    n, cin, h, wd = x.shape
    cout = w.shape[1]
    y = jnp.einsum("ncij,cokl->noikjl", x, w, precision=_HI)
    return y.reshape(n, cout, 2 * h, 2 * wd) + b[None, :, None, None]


def _crop_concat_ref(up, skip):
    sh, sw = up.shape[2], up.shape[3]
    oh = (skip.shape[2] - sh) // 2
    ow = (skip.shape[3] - sw) // 2
    return jnp.concatenate([skip[:, :, oh:oh + sh, ow:ow + sw], up], axis=1)


def unet_forward_ref(x, params):
    def dbl(t, p):
        w1, b1, w2, b2 = p
        return _conv_ref(_conv_ref(t, w1, b1), w2, b2)

    relu = lambda t: jnp.maximum(t, 0.0)
    c1 = dbl(x, params["conv1"]); p1 = _pool_ref(relu(c1))
    c2 = dbl(p1, params["conv2"]); p2 = _pool_ref(relu(c2))
    c3 = dbl(p2, params["conv3"]); p3 = _pool_ref(relu(c3))
    c4 = dbl(p3, params["conv4"]); p4 = _pool_ref(relu(c4))
    c5 = dbl(p4, params["conv5"])
    u1 = _convt_ref(c5, *params["up1"])
    d6 = relu(dbl(_crop_concat_ref(u1, c4), params["conv6"]))
    u2 = _convt_ref(d6, *params["up2"])
    d7 = relu(dbl(_crop_concat_ref(u2, c3), params["conv7"]))
    u3 = _convt_ref(d7, *params["up3"])
    d8 = relu(dbl(_crop_concat_ref(u3, c2), params["conv8"]))
    u4 = _convt_ref(d8, *params["up4"])
    d9 = relu(dbl(_crop_concat_ref(u4, c1), params["conv9"]))
    w10, b10 = params["conv10"]
    return _conv_ref(d9, w10, b10)


# --------------------------------------------------------------------------
# self-tests
# --------------------------------------------------------------------------
def _check_conv3x3():
    kx, kw, kb = jax.random.split(jax.random.PRNGKey(7), 3)
    x = jax.random.normal(kx, (2, 3, 40, 36), jnp.float32)          # NCHW
    w = jax.random.normal(kw, (5, 3, 3, 3), jnp.float32)
    b = jax.random.normal(kb, (5,), jnp.float32)
    y = conv3x3(jnp.transpose(x, (0, 2, 1, 3)), w, b)
    y = jnp.transpose(y, (0, 2, 1, 3))
    ref = _conv_ref(x, w, b)
    if not bool(jnp.allclose(y, ref, atol=1e-3, rtol=1e-3)):
        raise AssertionError("conv3x3 Pallas kernel mismatch vs lax.conv")


def _check_conv_transpose():
    kx, kw, kb = jax.random.split(jax.random.PRNGKey(11), 3)
    x = jax.random.normal(kx, (2, 6, 4, 4), jnp.float32)            # NCHW
    w = jax.random.normal(kw, (6, 3, 2, 2), jnp.float32)
    b = jax.random.normal(kb, (3,), jnp.float32)
    y = conv_transpose2x2(jnp.transpose(x, (0, 2, 1, 3)), w, b)
    y = jnp.transpose(y, (0, 2, 1, 3))
    ref = _convt_ref(x, w, b)
    if not bool(jnp.allclose(y, ref, atol=1e-3, rtol=1e-3)):
        raise AssertionError("conv_transpose2x2 Pallas kernel mismatch")


if __name__ == "__main__":
    key = jax.random.PRNGKey(0)
    kx, kp = jax.random.split(key)
    params = init_params(kp)
    x = jax.random.normal(kx, (BATCH, IN_CH, SPATIAL, SPATIAL), jnp.float32)

    _check_conv3x3()
    _check_conv_transpose()

    out = jax.block_until_ready(jax.jit(unet_forward)(x, params))
    ref = jax.block_until_ready(jax.jit(unet_forward_ref)(x, params))

    assert out.shape == (BATCH, NUM_CLASSES, 4, 4), out.shape
    assert bool(jnp.all(jnp.isfinite(out)))
    err = float(jnp.max(jnp.abs(out - ref)))
    scale = float(jnp.max(jnp.abs(ref)))
    assert err <= 5e-3 * max(1.0, scale), f"UNet mismatch: err={err}, scale={scale}"
    print("KERNEL_OK")
</pallas_src>

<mosaic_0001>
module attributes {stable_mosaic.version = 11 : i64} {
  func.func @_conv3x3_standalone_kernel(%arg0: i32, %arg1: memref<1x40x3x36xf32, #tpu.memory_space<vmem>>, %arg2: memref<5x27xf32, #tpu.memory_space<vmem>>, %arg3: memref<5x1xf32, #tpu.memory_space<vmem>>, %arg4: memref<1x38x5x34xf32, #tpu.memory_space<vmem>>) attributes {dimension_semantics = [#tpu.dimension_semantics<parallel>], iteration_bounds = array<i64: 2>, scalar_prefetch = 0 : i64, scratch_operands = 0 : i64, tpu.core_type = #tpu.core_type<tc>, window_params = [{transform_indices = @transform_0, window_bounds = array<i64: 1, 40, 3, 36>}, {pipeline_mode = #tpu.pipeline_mode<synchronous>, transform_indices = @transform_1, window_bounds = array<i64: 5, 27>}, {pipeline_mode = #tpu.pipeline_mode<synchronous>, transform_indices = @transform_2, window_bounds = array<i64: 5, 1>}, {transform_indices = @transform_3, window_bounds = array<i64: 1, 38, 5, 34>}]} {
    %c0 = arith.constant 0 : index
    %c0_0 = arith.constant 0 : index
    %0 = vector.load %arg2[%c0, %c0_0] : memref<5x27xf32, #tpu.memory_space<vmem>>, vector<5x27xf32>
    %c0_1 = arith.constant 0 : index
    %c0_2 = arith.constant 0 : index
    %1 = vector.load %arg3[%c0_1, %c0_2] : memref<5x1xf32, #tpu.memory_space<vmem>>, vector<5x1xf32>
    %c0_i32 = arith.constant 0 : i32
    %c3_i32 = arith.constant 3 : i32
    %2 = arith.addi %c0_i32, %c3_i32 : i32
    %c1_i32 = arith.constant 1 : i32
    scf.for %arg5 = %c0_i32 to %2 step %c1_i32  : i32 {
      %c16_i32 = arith.constant 16 : i32
      %3 = arith.muli %arg5, %c16_i32 : i32
      %c22_i32 = arith.constant 22 : i32
      %4 = arith.minsi %3, %c22_i32 : i32
      %c0_4 = arith.constant 0 : index
      %5 = arith.index_cast %4 : i32 to index
      %c0_5 = arith.constant 0 : index
      %c0_6 = arith.constant 0 : index
      %6 = vector.load %arg1[%c0_4, %5, %c0_5, %c0_6] : memref<1x40x3x36xf32, #tpu.memory_space<vmem>>, vector<1x18x3x36xf32>
      %7 = vector.shape_cast %6 : vector<1x18x3x36xf32> to vector<18x3x36xf32>
      %8 = vector.extract_strided_slice %7 {offsets = [0, 0, 0], sizes = [1, 3, 34], strides = [1, 1, 1]} : vector<18x3x36xf32> to vector<1x3x34xf32>
      %9 = vector.shape_cast %8 : vector<1x3x34xf32> to vector<3x34xf32>
      %10 = vector.extract_strided_slice %7 {offsets = [0, 0, 1], sizes = [1, 3, 34], strides = [1, 1, 1]} : vector<18x3x36xf32> to vector<1x3x34xf32>
      %11 = vector.shape_cast %10 : vector<1x3x34xf32> to vector<3x34xf32>
      %12 = vector.extract_strided_slice %7 {offsets = [0, 0, 2], sizes = [1, 3, 34], strides = [1, 1, 1]} : vector<18x3x36xf32> to vector<1x3x34xf32>
      %13 = vector.shape_cast %12 : vector<1x3x34xf32> to vector<3x34xf32>
      %14 = vector.extract_strided_slice %7 {offsets = [1, 0, 0], sizes = [1, 3, 34], strides = [1, 1, 1]} : vector<18x3x36xf32> to vector<1x3x34xf32>
      %15 = vector.shape_cast %14 : vector<1x3x34xf32> to vector<3x34xf32>
      %16 = vector.extract_strided_slice %7 {offsets = [1, 0, 1], sizes = [1, 3, 34], strides = [1, 1, 1]} : vector<18x3x36xf32> to vector<1x3x34xf32>
      %17 = vector.shape_cast %16 : vector<1x3x34xf32> to vector<3x34xf32>
      %18 = vector.extract_strided_slice %7 {offsets = [1, 0, 2], sizes = [1, 3, 34], strides = [1, 1, 1]} : vector<18x3x36xf32> to vector<1x3x34xf32>
      %19 = vector.shape_cast %18 : vector<1x3x34xf32> to vector<3x34xf32>
      %20 = vector.extract_strided_slice %7 {offsets = [2, 0, 0], sizes = [1, 3, 34], strides = [1, 1, 1]} : vector<18x3x36xf32> to vector<1x3x34xf32>
      %21 = vector.shape_cast %20 : vector<1x3x34xf32> to vector<3x34xf32>
      %22 = vector.extract_strided_slice %7 {offsets = [2, 0, 1], sizes = [1, 3, 34], strides = [1, 1, 1]} : vector<18x3x36xf32> to vector<1x3x34xf32>
      %23 = vector.shape_cast %22 : vector<1x3x34xf32> to vector<3x34xf32>
      %24 = vector.extract_strided_slice %7 {offsets = [2, 0, 2], sizes = [1, 3, 34], strides = [1, 1, 1]} : vector<18x3x36xf32> to vector<1x3x34xf32>
      %25 = vector.shape_cast %24 : vector<1x3x34xf32> to vector<3x34xf32>
      %26 = tpu.concatenate %9, %11, %13, %15, %17, %19, %21, %23, %25 in 0 : vector<3x34xf32>, vector<3x34xf32>, vector<3x34xf32>, vector<3x34xf32>, vector<3x34xf32>, vector<3x34xf32>, vector<3x34xf32>, vector<3x34xf32>, vector<3x34xf32> -> vector<27x34xf32>
      %27 = vector.extract_strided_slice %7 {offsets = [1, 0, 0], sizes = [1, 3, 34], strides = [1, 1, 1]} : vector<18x3x36xf32> to vector<1x3x34xf32>
      %28 = vector.shape_cast %27 : vector<1x3x34xf32> to vector<3x34xf32>
      %29 = vector.extract_strided_slice %7 {offsets = [1, 0, 1], sizes = [1, 3, 34], strides = [1, 1, 1]} : vector<18x3x36xf32> to vector<1x3x34xf32>
      %30 = vector.shape_cast %29 : vector<1x3x34xf32> to vector<3x34xf32>
      %31 = vector.extract_strided_slice %7 {offsets = [1, 0, 2], sizes = [1, 3, 34], strides = [1, 1, 1]} : vector<18x3x36xf32> to vector<1x3x34xf32>
      %32 = vector.shape_cast %31 : vector<1x3x34xf32> to vector<3x34xf32>
      %33 = vector.extract_strided_slice %7 {offsets = [2, 0, 0], sizes = [1, 3, 34], strides = [1, 1, 1]} : vector<18x3x36xf32> to vector<1x3x34xf32>
      %34 = vector.shape_cast %33 : vector<1x3x34xf32> to vector<3x34xf32>
      %35 = vector.extract_strided_slice %7 {offsets = [2, 0, 1], sizes = [1, 3, 34], strides = [1, 1, 1]} : vector<18x3x36xf32> to vector<1x3x34xf32>
      %36 = vector.shape_cast %35 : vector<1x3x34xf32> to vector<3x34xf32>
      %37 = vector.extract_strided_slice %7 {offsets = [2, 0, 2], sizes = [1, 3, 34], strides = [1, 1, 1]} : vector<18x3x36xf32> to vector<1x3x34xf32>
      %38 = vector.shape_cast %37 : vector<1x3x34xf32> to vector<3x34xf32>
      %39 = vector.extract_strided_slice %7 {offsets = [3, 0, 0], sizes = [1, 3, 34], strides = [1, 1, 1]} : vector<18x3x36xf32> to vector<1x3x34xf32>
      %40 = vector.shape_cast %39 : vector<1x3x34xf32> to vector<3x34xf32>
      %41 = vector.extract_strided_slice %7 {offsets = [3, 0, 1], sizes = [1, 3, 34], strides = [1, 1, 1]} : vector<18x3x36xf32> to vector<1x3x34xf32>
      %42 = vector.shape_cast %41 : vector<1x3x34xf32> to vector<3x34xf32>
      %43 = vector.extract_strided_slice %7 {offsets = [3, 0, 2], sizes = [1, 3, 34], strides = [1, 1, 1]} : vector<18x3x36xf32> to vector<1x3x34xf32>
      %44 = vector.shape_cast %43 : vector<1x3x34xf32> to vector<3x34xf32>
      %45 = tpu.concatenate %28, %30, %32, %34, %36, %38, %40, %42, %44 in 0 : vector<3x34xf32>, vector<3x34xf32>, vector<3x34xf32>, vector<3x34xf32>, vector<3x34xf32>, vector<3x34xf32>, vector<3x34xf32>, vector<3x34xf32>, vector<3x34xf32> -> vector<27x34xf32>
      %46 = vector.extract_strided_slice %7 {offsets = [2, 0, 0], sizes = [1, 3, 34], strides = [1, 1, 1]} : vector<18x3x36xf32> to vector<1x3x34xf32>
      %47 = vector.shape_cast %46 : vector<1x3x34xf32> to vector<3x34xf32>
      %48 = vector.extract_strided_slice %7 {offsets = [2, 0, 1], sizes = [1, 3, 34], strides = [1, 1, 1]} : vector<18x3x36xf32> to vector<1x3x34xf32>
      %49 = vector.shape_cast %48 : vector<1x3x34xf32> to vector<3x34xf32>
      %50 = vector.extract_strided_slice %7 {offsets = [2, 0, 2], sizes = [1, 3, 34], strides = [1, 1, 1]} : vector<18x3x36xf32> to vector<1x3x34xf32>
      %51 = vector.shape_cast %50 : vector<1x3x34xf32> to vector<3x34xf32>
      %52 = vector.extract_strided_slice %7 {offsets = [3, 0, 0], sizes = [1, 3, 34], strides = [1, 1, 1]} : vector<18x3x36xf32> to vector<1x3x34xf32>
      %53 = vector.shape_cast %52 : vector<1x3x34xf32> to vector<3x34xf32>
      %54 = vector.extract_strided_slice %7 {offsets = [3, 0, 1], sizes = [1, 3, 34], strides = [1, 1, 1]} : vector<18x3x36xf32> to vector<1x3x34xf32>
      %55 = vector.shape_cast %54 : vector<1x3x34xf32> to vector<3x34xf32>
      %56 = vector.extract_strided_slice %7 {offsets = [3, 0, 2], sizes = [1, 3, 34], strides = [1, 1, 1]} : vector<18x3x36xf32> to vector<1x3x34xf32>
      %57 = vector.shape_cast %56 : vector<1x3x34xf32> to vector<3x34xf32>
      %58 = vector.extract_strided_slice %7 {offsets = [4, 0, 0], sizes = [1, 3, 34], strides = [1, 1, 1]} : vector<18x3x36xf32> to vector<1x3x34xf32>
      %59 = vector.shape_cast %58 : vector<1x3x34xf32> to vector<3x34xf32>
      %60 = vector.extract_strided_slice %7 {offsets = [4, 0, 1], sizes = [1, 3, 34], strides = [1, 1, 1]} : vector<18x3x36xf32> to vector<1x3x34xf32>
      %61 = vector.shape_cast %60 : vector<1x3x34xf32> to vector<3x34xf32>
      %62 = vector.extract_strided_slice %7 {offsets = [4, 0, 2], sizes = [1, 3, 34], strides = [1, 1, 1]} : vector<18x3x36xf32> to vector<1x3x34xf32>
      %63 = vector.shape_cast %62 : vector<1x3x34xf32> to vector<3x34xf32>
      %64 = tpu.concatenate %47, %49, %51, %53, %55, %57, %59, %61, %63 in 0 : vector<3x34xf32>, vector<3x34xf32>, vector<3x34xf32>, vector<3x34xf32>, vector<3x34xf32>, vector<3x34xf32>, vector<3x34xf32>, vector<3x34xf32>, vector<3x34xf32> -> vector<27x34xf32>
      %65 = vector.extract_strided_slice %7 {offsets = [3, 0, 0], sizes = [1, 3, 34], strides = [1, 1, 1]} : vector<18x3x36xf32> to vector<1x3x34xf32>
      %66 = vector.shape_cast %65 : vector<1x3x34xf32> to vector<3x34xf32>
      %67 = vector.extract_strided_slice %7 {offsets = [3, 0, 1], sizes = [1, 3, 34], strides = [1, 1, 1]} : vector<18x3x36xf32> to vector<1x3x34xf32>
      %68 = vector.shape_cast %67 : vector<1x3x34xf32> to vector<3x34xf32>
      %69 = vector.extract_strided_slice %7 {offsets = [3, 0, 2], sizes = [1, 3, 34], strides = [1, 1, 1]} : vector<18x3x36xf32> to vector<1x3x34xf32>
      %70 = vector.shape_cast %69 : vector<1x3x34xf32> to vector<3x34xf32>
      %71 = vector.extract_strided_slice %7 {offsets = [4, 0, 0], sizes = [1, 3, 34], strides = [1, 1, 1]} : vector<18x3x36xf32> to vector<1x3x34xf32>
      %72 = vector.shape_cast %71 : vector<1x3x34xf32> to vector<3x34xf32>
      %73 = vector.extract_strided_slice %7 {offsets = [4, 0, 1], sizes = [1, 3, 34], strides = [1, 1, 1]} : vector<18x3x36xf32> to vector<1x3x34xf32>
      %74 = vector.shape_cast %73 : vector<1x3x34xf32> to vector<3x34xf32>
      %75 = vector.extract_strided_slice %7 {offsets = [4, 0, 2], sizes = [1, 3, 34], strides = [1, 1, 1]} : vector<18x3x36xf32> to vector<1x3x34xf32>
      %76 = vector.shape_cast %75 : vector<1x3x34xf32> to vector<3x34xf32>
      %77 = vector.extract_strided_slice %7 {offsets = [5, 0, 0], sizes = [1, 3, 34], strides = [1, 1, 1]} : vector<18x3x36xf32> to vector<1x3x34xf32>
      %78 = vector.shape_cast %77 : vector<1x3x34xf32> to vector<3x34xf32>
      %79 = vector.extract_strided_slice %7 {offsets = [5, 0, 1], sizes = [1, 3, 34], strides = [1, 1, 1]} : vector<18x3x36xf32> to vector<1x3x34xf32>
      %80 = vector.shape_cast %79 : vector<1x3x34xf32> to vector<3x34xf32>
      %81 = vector.extract_strided_slice %7 {offsets = [5, 0, 2], sizes = [1, 3, 34], strides = [1, 1, 1]} : vector<18x3x36xf32> to vector<1x3x34xf32>
      %82 = vector.shape_cast %81 : vector<1x3x34xf32> to vector<3x34xf32>
      %83 = tpu.concatenate %66, %68, %70, %72, %74, %76, %78, %80, %82 in 0 : vector<3x34xf32>, vector<3x34xf32>, vector<3x34xf32>, vector<3x34xf32>, vector<3x34xf32>, vector<3x34xf32>, vector<3x34xf32>, vector<3x34xf32>, vector<3x34xf32> -> vector<27x34xf32>
      %84 = vector.extract_strided_slice %7 {offsets = [4, 0, 0], sizes = [1, 3, 34], strides = [1, 1, 1]} : vector<18x3x36xf32> to vector<1x3x34xf32>
      %85 = vector.shape_cast %84 : vector<1x3x34xf32> to vector<3x34xf32>
      %86 = vector.extract_strided_slice %7 {offsets = [4, 0, 1], sizes = [1, 3, 34], strides = [1, 1, 1]} : vector<18x3x36xf32> to vector<1x3x34xf32>
      %87 = vector.shape_cast %86 : vector<1x3x34xf32> to vector<3x34xf32>
      %88 = vector.extract_strided_slice %7 {offsets = [4, 0, 2], sizes = [1, 3, 34], strides = [1, 1, 1]} : vector<18x3x36xf32> to vector<1x3x34xf32>
      %89 = vector.shape_cast %88 : vector<1x3x34xf32> to vector<3x34xf32>
      %90 = vector.extract_strided_slice %7 {offsets = [5, 0, 0], sizes = [1, 3, 34], strides = [1, 1, 1]} : vector<18x3x36xf32> to vector<1x3x34xf32>
      %91 = vector.shape_cast %90 : vector<1x3x34xf32> to vector<3x34xf32>
      %92 = vector.extract_strided_slice %7 {offsets = [5, 0, 1], sizes = [1, 3, 34], strides = [1, 1, 1]} : vector<18x3x36xf32> to vector<1x3x34xf32>
      %93 = vector.shape_cast %92 : vector<1x3x34xf32> to vector<3x34xf32>
      %94 = vector.extract_strided_slice %7 {offsets = [5, 0, 2], sizes = [1, 3, 34], strides = [1, 1, 1]} : vector<18x3x36xf32> to vector<1x3x34xf32>
      %95 = vector.shape_cast %94 : vector<1x3x34xf32> to vector<3x34xf32>
      %96 = vector.extract_strided_slice %7 {offsets = [6, 0, 0], sizes = [1, 3, 34], strides = [1, 1, 1]} : vector<18x3x36xf32> to vector<1x3x34xf32>
      %97 = vector.shape_cast %96 : vector<1x3x34xf32> to vector<3x34xf32>
      %98 = vector.extract_strided_slice %7 {offsets = [6, 0, 1], sizes = [1, 3, 34], strides = [1, 1, 1]} : vector<18x3x36xf32> to vector<1x3x34xf32>
      %99 = vector.shape_cast %98 : vector<1x3x34xf32> to vector<3x34xf32>
      %100 = vector.extract_strided_slice %7 {offsets = [6, 0, 2], sizes = [1, 3, 34], strides = [1, 1, 1]} : vector<18x3x36xf32> to vector<1x3x34xf32>
      %101 = vector.shape_cast %100 : vector<1x3x34xf32> to vector<3x34xf32>
      %102 = tpu.concatenate %85, %87, %89, %91, %93, %95, %97, %99, %101 in 0 : vector<3x34xf32>, vector<3x34xf32>, vector<3x34xf32>, vector<3x34xf32>, vector<3x34xf32>, vector<3x34xf32>, vector<3x34xf32>, vector<3x34xf32>, vector<3x34xf32> -> vector<27x34xf32>
      %103 = vector.extract_strided_slice %7 {offsets = [5, 0, 0], sizes = [1, 3, 34], strides = [1, 1, 1]} : vector<18x3x36xf32> to vector<1x3x34xf32>
      %104 = vector.shape_cast %103 : vector<1x3x34xf32> to vector<3x34xf32>
      %105 = vector.extract_strided_slice %7 {offsets = [5, 0, 1], sizes = [1, 3, 34], strides = [1, 1, 1]} : vector<18x3x36xf32> to vector<1x3x34xf32>
      %106 = vector.shape_cast %105 : vector<1x3x34xf32> to vector<3x34xf32>
      %107 = vector.extract_strided_slice %7 {offsets = [5, 0, 2], sizes = [1, 3, 34], strides = [1, 1, 1]} : vector<18x3x36xf32> to vector<1x3x34xf32>
      %108 = vector.shape_cast %107 : vector<1x3x34xf32> to vector<3x34xf32>
      %109 = vector.extract_strided_slice %7 {offsets = [6, 0, 0], sizes = [1, 3, 34], strides = [1, 1, 1]} : vector<18x3x36xf32> to vector<1x3x34xf32>
      %110 = vector.shape_cast %109 : vector<1x3x34xf32> to vector<3x34xf32>
      %111 = vector.extract_strided_slice %7 {offsets = [6, 0, 1], sizes = [1, 3, 34], strides = [1, 1, 1]} : vector<18x3x36xf32> to vector<1x3x34xf32>
      %112 = vector.shape_cast %111 : vector<1x3x34xf32> to vector<3x34xf32>
      %113 = vector.extract_strided_slice %7 {offsets = [6, 0, 2], sizes = [1, 3, 34], strides = [1, 1, 1]} : vector<18x3x36xf32> to vector<1x3x34xf32>
      %114 = vector.shape_cast %113 : vector<1x3x34xf32> to vector<3x34xf32>
      %115 = vector.extract_strided_slice %7 {offsets = [7, 0, 0], sizes = [1, 3, 34], strides = [1, 1, 1]} : vector<18x3x36xf32> to vector<1x3x34xf32>
      %116 = vector.shape_cast %115 : vector<1x3x34xf32> to vector<3x34xf32>
      %117 = vector.extract_strided_slice %7 {offsets = [7, 0, 1], sizes = [1, 3, 34], strides = [1, 1, 1]} : vector<18x3x36xf32> to vector<1x3x34xf32>
      %118 = vector.shape_cast %117 : vector<1x3x34xf32> to vector<3x34xf32>
      %119 = vector.extract_strided_slice %7 {offsets = [7, 0, 2], sizes = [1, 3, 34], strides = [1, 1, 1]} : vector<18x3x36xf32> to vector<1x3x34xf32>
      %120 = vector.shape_cast %119 : vector<1x3x34xf32> to vector<3x34xf32>
      %121 = tpu.concatenate %104, %106, %108, %110, %112, %114, %116, %118, %120 in 0 : vector<3x34xf32>, vector<3x34xf32>, vector<3x34xf32>, vector<3x34xf32>, vector<3x34xf32>, vector<3x34xf32>, vector<3x34xf32>, vector<3x34xf32>, vector<3x34xf32> -> vector<27x34xf32>
      %122 = vector.extract_strided_slice %7 {offsets = [6, 0, 0], sizes = [1, 3, 34], strides = [1, 1, 1]} : vector<18x3x36xf32> to vector<1x3x34xf32>
      %123 = vector.shape_cast %122 : vector<1x3x34xf32> to vector<3x34xf32>
      %124 = vector.extract_strided_slice %7 {offsets = [6, 0, 1], sizes = [1, 3, 34], strides = [1, 1, 1]} : vector<18x3x36xf32> to vector<1x3x34xf32>
      %125 = vector.shape_cast %124 : vector<1x3x34xf32> to vector<3x34xf32>
      %126 = vector.extract_strided_slice %7 {offsets = [6, 0, 2], sizes = [1, 3, 34], strides = [1, 1, 1]} : vector<18x3x36xf32> to vector<1x3x34xf32>
      %127 = vector.shape_cast %126 : vector<1x3x34xf32> to vector<3x34xf32>
      %128 = vector.extract_strided_slice %7 {offsets = [7, 0, 0], sizes = [1, 3, 34], strides = [1, 1, 1]} : vector<18x3x36xf32> to vector<1x3x34xf32>
      %129 = vector.shape_cast %128 : vector<1x3x34xf32> to vector<3x34xf32>
      %130 = vector.extract_strided_slice %7 {offsets = [7, 0, 1], sizes = [1, 3, 34], strides = [1, 1, 1]} : vector<18x3x36xf32> to vector<1x3x34xf32>
      %131 = vector.shape_cast %130 : vector<1x3x34xf32> to vector<3x34xf32>
      %132 = vector.extract_strided_slice %7 {offsets = [7, 0, 2], sizes = [1, 3, 34], strides = [1, 1, 1]} : vector<18x3x36xf32> to vector<1x3x34xf32>
      %133 = vector.shape_cast %132 : vector<1x3x34xf32> to vector<3x34xf32>
      %134 = vector.extract_strided_slice %7 {offsets = [8, 0, 0], sizes = [1, 3, 34], strides = [1, 1, 1]} : vector<18x3x36xf32> to vector<1x3x34xf32>
      %135 = vector.shape_cast %134 : vector<1x3x34xf32> to vector<3x34xf32>
      %136 = vector.extract_strided_slice %7 {offsets = [8, 0, 1], sizes = [1, 3, 34], strides = [1, 1, 1]} : vector<18x3x36xf32> to vector<1x3x34xf32>
      %137 = vector.shape_cast %136 : vector<1x3x34xf32> to vector<3x34xf32>
      %138 = vector.extract_strided_slice %7 {offsets = [8, 0, 2], sizes = [1, 3, 34], strides = [1, 1, 1]} : vector<18x3x36xf32> to vector<1x3x34xf32>
      %139 = vector.shape_cast %138 : vector<1x3x34xf32> to vector<3x34xf32>
      %140 = tpu.concatenate %123, %125, %127, %129, %131, %133, %135, %137, %139 in 0 : vector<3x34xf32>, vector<3x34xf32>, vector<3x34xf32>, vector<3x34xf32>, vector<3x34xf32>, vector<3x34xf32>, vector<3x34xf32>, vector<3x34xf32>, vector<3x34xf32> -> vector<27x34xf32>
      %141 = vector.extract_strided_slice %7 {offsets = [7, 0, 0], sizes = [1, 3, 34], strides = [1, 1, 1]} : vector<18x3x36xf32> to vector<1x3x34xf32>
      %142 = vector.shape_cast %141 : vector<1x3x34xf32> to vector<3x34xf32>
      %143 = vector.extract_strided_slice %7 {offsets = [7, 0, 1], sizes = [1, 3, 34], strides = [1, 1, 1]} : vector<18x3x36xf32> to vector<1x3x34xf32>
      %144 = vector.shape_cast %143 : vector<1x3x34xf32> to vector<3x34xf32>
      %145 = vector.extract_strided_slice %7 {offsets = [7, 0, 2], sizes = [1, 3, 34], strides = [1, 1, 1]} : vector<18x3x36xf32> to vector<1x3x34xf32>
      %146 = vector.shape_cast %145 : vector<1x3x34xf32> to vector<3x34xf32>
      %147 = vector.extract_strided_slice %7 {offsets = [8, 0, 0], sizes = [1, 3, 34], strides = [1, 1, 1]} : vector<18x3x36xf32> to vector<1x3x34xf32>
      %148 = vector.shape_cast %147 : vector<1x3x34xf32> to vector<3x34xf32>
      %149 = vector.extract_strided_slice %7 {offsets = [8, 0, 1], sizes = [1, 3, 34], strides = [1, 1, 1]} : vector<18x3x36xf32> to vector<1x3x34xf32>
      %150 = vector.shape_cast %149 : vector<1x3x34xf32> to vector<3x34xf32>
      %151 = vector.extract_strided_slice %7 {offsets = [8, 0, 2], sizes = [1, 3, 34], strides = [1, 1, 1]} : vector<18x3x36xf32> to vector<1x3x34xf32>
      %152 = vector.shape_cast %151 : vector<1x3x34xf32> to vector<3x34xf32>
      %153 = vector.extract_strided_slice %7 {offsets = [9, 0, 0], sizes = [1, 3, 34], strides = [1, 1, 1]} : vector<18x3x36xf32> to vector<1x3x34xf32>
      %154 = vector.shape_cast %153 : vector<1x3x34xf32> to vector<3x34xf32>
      %155 = vector.extract_strided_slice %7 {offsets = [9, 0, 1], sizes = [1, 3, 34], strides = [1, 1, 1]} : vector<18x3x36xf32> to vector<1x3x34xf32>
      %156 = vector.shape_cast %155 : vector<1x3x34xf32> to vector<3x34xf32>
      %157 = vector.extract_strided_slice %7 {offsets = [9, 0, 2], sizes = [1, 3, 34], strides = [1, 1, 1]} : vector<18x3x36xf32> to vector<1x3x34xf32>
      %158 = vector.shape_cast %157 : vector<1x3x34xf32> to vector<3x34xf32>
      %159 = tpu.concatenate %142, %144, %146, %148, %150, %152, %154, %156, %158 in 0 : vector<3x34xf32>, vector<3x34xf32>, vector<3x34xf32>, vector<3x34xf32>, vector<3x34xf32>, vector<3x34xf32>, vector<3x34xf32>, vector<3x34xf32>, vector<3x34xf32> -> vector<27x34xf32>
      %160 = vector.extract_strided_slice %7 {offsets = [8, 0, 0], sizes = [1, 3, 34], strides = [1, 1, 1]} : vector<18x3x36xf32> to vector<1x3x34xf32>
      %161 = vector.shape_cast %160 : vector<1x3x34xf32> to vector<3x34xf32>
      %162 = vector.extract_strided_slice %7 {offsets = [8, 0, 1], sizes = [1, 3, 34], strides = [1, 1, 1]} : vector<18x3x36xf32> to vector<1x3x34xf32>
      %163 = vector.shape_cast %162 : vector<1x3x34xf32> to vector<3x34xf32>
      %164 = vector.extract_strided_slice %7 {offsets = [8, 0, 2], sizes = [1, 3, 34], strides = [1, 1, 1]} : vector<18x3x36xf32> to vector<1x3x34xf32>
      %165 = vector.shape_cast %164 : vector<1x3x34xf32> to vector<3x34xf32>
      %166 = vector.extract_strided_slice %7 {offsets = [9, 0, 0], sizes = [1, 3, 34], strides = [1, 1, 1]} : vector<18x3x36xf32> to vector<1x3x34xf32>
      %167 = vector.shape_cast %166 : vector<1x3x34xf32> to vector<3x34xf32>
      %168 = vector.extract_strided_slice %7 {offsets = [9, 0, 1], sizes = [1, 3, 34], strides = [1, 1, 1]} : vector<18x3x36xf32> to vector<1x3x34xf32>
      %169 = vector.shape_cast %168 : vector<1x3x34xf32> to vector<3x34xf32>
      %170 = vector.extract_strided_slice %7 {offsets = [9, 0, 2], sizes = [1, 3, 34], strides = [1, 1, 1]} : vector<18x3x36xf32> to vector<1x3x34xf32>
      %171 = vector.shape_cast %170 : vector<1x3x34xf32> to vector<3x34xf32>
      %172 = vector.extract_strided_slice %7 {offsets = [10, 0, 0], sizes = [1, 3, 34], strides = [1, 1, 1]} : vector<18x3x36xf32> to vector<1x3x34xf32>
      %173 = vector.shape_cast %172 : vector<1x3x34xf32> to vector<3x34xf32>
      %174 = vector.extract_strided_slice %7 {offsets = [10, 0, 1], sizes = [1, 3, 34], strides = [1, 1, 1]} : vector<18x3x36xf32> to vector<1x3x34xf32>
      %175 = vector.shape_cast %174 : vector<1x3x34xf32> to vector<3x34xf32>
      %176 = vector.extract_strided_slice %7 {offsets = [10, 0, 2], sizes = [1, 3, 34], strides = [1, 1, 1]} : vector<18x3x36xf32> to vector<1x3x34xf32>
      %177 = vector.shape_cast %176 : vector<1x3x34xf32> to vector<3x34xf32>
      %178 = tpu.concatenate %161, %163, %165, %167, %169, %171, %173, %175, %177 in 0 : vector<3x34xf32>, vector<3x34xf32>, vector<3x34xf32>, vector<3x34xf32>, vector<3x34xf32>, vector<3x34xf32>, vector<3x34xf32>, vector<3x34xf32>, vector<3x34xf32> -> vector<27x34xf32>
      %179 = vector.extract_strided_slice %7 {offsets = [9, 0, 0], sizes = [1, 3, 34], strides = [1, 1, 1]} : vector<18x3x36xf32> to vector<1x3x34xf32>
      %180 = vector.shape_cast %179 : vector<1x3x34xf32> to vector<3x34xf32>
      %181 = vector.extract_strided_slice %7 {offsets = [9, 0, 1], sizes = [1, 3, 34], strides = [1, 1, 1]} : vector<18x3x36xf32> to vector<1x3x34xf32>
      %182 = vector.shape_cast %181 : vector<1x3x34xf32> to vector<3x34xf32>
      %183 = vector.extract_strided_slice %7 {offsets = [9, 0, 2], sizes = [1, 3, 34], strides = [1, 1, 1]} : vector<18x3x36xf32> to vector<1x3x34xf32>
      %184 = vector.shape_cast %183 : vector<1x3x34xf32> to vector<3x34xf32>
      %185 = vector.extract_strided_slice %7 {offsets = [10, 0, 0], sizes = [1, 3, 34], strides = [1, 1, 1]} : vector<18x3x36xf32> to vector<1x3x34xf32>
      %186 = vector.shape_cast %185 : vector<1x3x34xf32> to vector<3x34xf32>
      %187 = vector.extract_strided_slice %7 {offsets = [10, 0, 1], sizes = [1, 3, 34], strides = [1, 1, 1]} : vector<18x3x36xf32> to vector<1x3x34xf32>
      %188 = vector.shape_cast %187 : vector<1x3x34xf32> to vector<3x34xf32>
      %189 = vector.extract_strided_slice %7 {offsets = [10, 0, 2], sizes = [1, 3, 34], strides = [1, 1, 1]} : vector<18x3x36xf32> to vector<1x3x34xf32>
      %190 = vector.shape_cast %189 : vector<1x3x34xf32> to vector<3x34xf32>
      %191 = vector.extract_strided_slice %7 {offsets = [11, 0, 0], sizes = [1, 3, 34], strides = [1, 1, 1]} : vector<18x3x36xf32> to vector<1x3x34xf32>
      %192 = vector.shape_cast %191 : vector<1x3x34xf32> to vector<3x34xf32>
      %193 = vector.extract_strided_slice %7 {offsets = [11, 0, 1], sizes = [1, 3, 34], strides = [1, 1, 1]} : vector<18x3x36xf32> to vector<1x3x34xf32>
      %194 = vector.shape_cast %193 : vector<1x3x34xf32> to vector<3x34xf32>
      %195 = vector.extract_strided_slice %7 {offsets = [11, 0, 2], sizes = [1, 3, 34], strides = [1, 1, 1]} : vector<18x3x36xf32> to vector<1x3x34xf32>
      %196 = vector.shape_cast %195 : vector<1x3x34xf32> to vector<3x34xf32>
      %197 = tpu.concatenate %180, %182, %184, %186, %188, %190, %192, %194, %196 in 0 : vector<3x34xf32>, vector<3x34xf32>, vector<3x34xf32>, vector<3x34xf32>, vector<3x34xf32>, vector<3x34xf32>, vector<3x34xf32>, vector<3x34xf32>, vector<3x34xf32> -> vector<27x34xf32>
      %198 = vector.extract_strided_slice %7 {offsets = [10, 0, 0], sizes = [1, 3, 34], strides = [1, 1, 1]} : vector<18x3x36xf32> to vector<1x3x34xf32>
      %199 = vector.shape_cast %198 : vector<1x3x34xf32> to vector<3x34xf32>
      %200 = vector.extract_strided_slice %7 {offsets = [10, 0, 1], sizes = [1, 3, 34], strides = [1, 1, 1]} : vector<18x3x36xf32> to vector<1x3x34xf32>
      %201 = vector.shape_cast %200 : vector<1x3x34xf32> to vector<3x34xf32>
      %202 = vector.extract_strided_slice %7 {offsets = [10, 0, 2], sizes = [1, 3, 34], strides = [1, 1, 1]} : vector<18x3x36xf32> to vector<1x3x34xf32>
      %203 = vector.shape_cast %202 : vector<1x3x34xf32> to vector<3x34xf32>
      %204 = vector.extract_strided_slice %7 {offsets = [11, 0, 0], sizes = [1, 3, 34], strides = [1, 1, 1]} : vector<18x3x36xf32> to vector<1x3x34xf32>
      %205 = vector.shape_cast %204 : vector<1x3x34xf32> to vector<3x34xf32>
      %206 = vector.extract_strided_slice %7 {offsets = [11, 0, 1], sizes = [1, 3, 34], strides = [1, 1, 1]} : vector<18x3x36xf32> to vector<1x3x34xf32>
      %207 = vector.shape_cast %206 : vector<1x3x34xf32> to vector<3x34xf32>
      %208 = vector.extract_strided_slice %7 {offsets = [11, 0, 2], sizes = [1, 3, 34], strides = [1, 1, 1]} : vector<18x3x36xf32> to vector<1x3x34xf32>
      %209 = vector.shape_cast %208 : vector<1x3x34xf32> to vector<3x34xf32>
      %210 = vector.extract_strided_slice %7 {offsets = [12, 0, 0], sizes = [1, 3, 34], strides = [1, 1, 1]} : vector<18x3x36xf32> to vector<1x3x34xf32>
      %211 = vector.shape_cast %210 : vector<1x3x34xf32> to vector<3x34xf32>
      %212 = vector.extract_strided_slice %7 {offsets = [12, 0, 1], sizes = [1, 3, 34], strides = [1, 1, 1]} : vector<18x3x36xf32> to vector<1x3x34xf32>
      %213 = vector.shape_cast %212 : vector<1x3x34xf32> to vector<3x34xf32>
      %214 = vector.extract_strided_slice %7 {offsets = [12, 0, 2], sizes = [1, 3, 34], strides = [1, 1, 1]} : vector<18x3x36xf32> to vector<1x3x34xf32>
      %215 = vector.shape_cast %214 : vector<1x3x34xf32> to vector<3x34xf32>
      %216 = tpu.concatenate %199, %201, %203, %205, %207, %209, %211, %213, %215 in 0 : vector<3x34xf32>, vector<3x34xf32>, vector<3x34xf32>, vector<3x34xf32>, vector<3x34xf32>, vector<3x34xf32>, vector<3x34xf32>, vector<3x34xf32>, vector<3x34xf32> -> vector<27x34xf32>
      %217 = vector.extract_strided_slice %7 {offsets = [11, 0, 0], sizes = [1, 3, 34], strides = [1, 1, 1]} : vector<18x3x36xf32> to vector<1x3x34xf32>
      %218 = vector.shape_cast %217 : vector<1x3x34xf32> to vector<3x34xf32>
      %219 = vector.extract_strided_slice %7 {offsets = [11, 0, 1], sizes = [1, 3, 34], strides = [1, 1, 1]} : vector<18x3x36xf32> to vector<1x3x34xf32>
      %220 = vector.shape_cast %219 : vector<1x3x34xf32> to vector<3x34xf32>
      %221 = vector.extract_strided_slice %7 {offsets = [11, 0, 2], sizes = [1, 3, 34], strides = [1, 1, 1]} : vector<18x3x36xf32> to vector<1x3x34xf32>
      %222 = vector.shape_cast %221 : vector<1x3x34xf32> to vector<3x34xf32>
      %223 = vector.extract_strided_slice %7 {offsets = [12, 0, 0], sizes = [1, 3, 34], strides = [1, 1, 1]} : vector<18x3x36xf32> to vector<1x3x34xf32>
      %224 = vector.shape_cast %223 : vector<1x3x34xf32> to vector<3x34xf32>
      %225 = vector.extract_strided_slice %7 {offsets = [12, 0, 1], sizes = [1, 3, 34], strides = [1, 1, 1]} : vector<18x3x36xf32> to vector<1x3x34xf32>
      %226 = vector.shape_cast %225 : vector<1x3x34xf32> to vector<3x34xf32>
      %227 = vector.extract_strided_slice %7 {offsets = [12, 0, 2], sizes = [1, 3, 34], strides = [1, 1, 1]} : vector<18x3x36xf32> to vector<1x3x34xf32>
      %228 = vector.shape_cast %227 : vector<1x3x34xf32> to vector<3x34xf32>
      %229 = vector.extract_strided_slice %7 {offsets = [13, 0, 0], sizes = [1, 3, 34], strides = [1, 1, 1]} : vector<18x3x36xf32> to vector<1x3x34xf32>
      %230 = vector.shape_cast %229 : vector<1x3x34xf32> to vector<3x34xf32>
      %231 = vector.extract_strided_slice %7 {offsets = [13, 0, 1], sizes = [1, 3, 34], strides = [1, 1, 1]} : vector<18x3x36xf32> to vector<1x3x34xf32>
      %232 = vector.shape_cast %231 : vector<1x3x34xf32> to vector<3x34xf32>
      %233 = vector.extract_strided_slice %7 {offsets = [13, 0, 2], sizes = [1, 3, 34], strides = [1, 1, 1]} : vector<18x3x36xf32> to vector<1x3x34xf32>
      %234 = vector.shape_cast %233 : vector<1x3x34xf32> to vector<3x34xf32>
      %235 = tpu.concatenate %218, %220, %222, %224, %226, %228, %230, %232, %234 in 0 : vector<3x34xf32>, vector<3x34xf32>, vector<3x34xf32>, vector<3x34xf32>, vector<3x34xf32>, vector<3x34xf32>, vector<3x34xf32>, vector<3x34xf32>, vector<3x34xf32> -> vector<27x34xf32>
      %236 = vector.extract_strided_slice %7 {offsets = [12, 0, 0], sizes = [1, 3, 34], strides = [1, 1, 1]} : vector<18x3x36xf32> to vector<1x3x34xf32>
      %237 = vector.shape_cast %236 : vector<1x3x34xf32> to vector<3x34xf32>
      %238 = vector.extract_strided_slice %7 {offsets = [12, 0, 1], sizes = [1, 3, 34], strides = [1, 1, 1]} : vector<18x3x36xf32> to vector<1x3x34xf32>
      %239 = vector.shape_cast %238 : vector<1x3x34xf32> to vector<3x34xf32>
      %240 = vector.extract_strided_slice %7 {offsets = [12, 0, 2], sizes = [1, 3, 34], strides = [1, 1, 1]} : vector<18x3x36xf32> to vector<1x3x34xf32>
      %241 = vector.shape_cast %240 : vector<1x3x34xf32> to vector<3x34xf32>
      %242 = vector.extract_strided_slice %7 {offsets = [13, 0, 0], sizes = [1, 3, 34], strides = [1, 1, 1]} : vector<18x3x36xf32> to vector<1x3x34xf32>
      %243 = vector.shape_cast %242 : vector<1x3x34xf32> to vector<3x34xf32>
      %244 = vector.extract_strided_slice %7 {offsets = [13, 0, 1], sizes = [1, 3, 34], strides = [1, 1, 1]} : vector<18x3x36xf32> to vector<1x3x34xf32>
      %245 = vector.shape_cast %244 : vector<1x3x34xf32> to vector<3x34xf32>
      %246 = vector.extract_strided_slice %7 {offsets = [13, 0, 2], sizes = [1, 3, 34], strides = [1, 1, 1]} : vector<18x3x36xf32> to vector<1x3x34xf32>
      %247 = vector.shape_cast %246 : vector<1x3x34xf32> to vector<3x34xf32>
      %248 = vector.extract_strided_slice %7 {offsets = [14, 0, 0], sizes = [1, 3, 34], strides = [1, 1, 1]} : vector<18x3x36xf32> to vector<1x3x34xf32>
      %249 = vector.shape_cast %248 : vector<1x3x34xf32> to vector<3x34xf32>
      %250 = vector.extract_strided_slice %7 {offsets = [14, 0, 1], sizes = [1, 3, 34], strides = [1, 1, 1]} : vector<18x3x36xf32> to vector<1x3x34xf32>
      %251 = vector.shape_cast %250 : vector<1x3x34xf32> to vector<3x34xf32>
      %252 = vector.extract_strided_slice %7 {offsets = [14, 0, 2], sizes = [1, 3, 34], strides = [1, 1, 1]} : vector<18x3x36xf32> to vector<1x3x34xf32>
      %253 = vector.shape_cast %252 : vector<1x3x34xf32> to vector<3x34xf32>
      %254 = tpu.concatenate %237, %239, %241, %243, %245, %247, %249, %251, %253 in 0 : vector<3x34xf32>, vector<3x34xf32>, vector<3x34xf32>, vector<3x34xf32>, vector<3x34xf32>, vector<3x34xf32>, vector<3x34xf32>, vector<3x34xf32>, vector<3x34xf32> -> vector<27x34xf32>
      %255 = vector.extract_strided_slice %7 {offsets = [13, 0, 0], sizes = [1, 3, 34], strides = [1, 1, 1]} : vector<18x3x36xf32> to vector<1x3x34xf32>
      %256 = vector.shape_cast %255 : vector<1x3x34xf32> to vector<3x34xf32>
      %257 = vector.extract_strided_slice %7 {offsets = [13, 0, 1], sizes = [1, 3, 34], strides = [1, 1, 1]} : vector<18x3x36xf32> to vector<1x3x34xf32>
      %258 = vector.shape_cast %257 : vector<1x3x34xf32> to vector<3x34xf32>
      %259 = vector.extract_strided_slice %7 {offsets = [13, 0, 2], sizes = [1, 3, 34], strides = [1, 1, 1]} : vector<18x3x36xf32> to vector<1x3x34xf32>
      %260 = vector.shape_cast %259 : vector<1x3x34xf32> to vector<3x34xf32>
      %261 = vector.extract_strided_slice %7 {offsets = [14, 0, 0], sizes = [1, 3, 34], strides = [1, 1, 1]} : vector<18x3x36xf32> to vector<1x3x34xf32>
      %262 = vector.shape_cast %261 : vector<1x3x34xf32> to vector<3x34xf32>
      %263 = vector.extract_strided_slice %7 {offsets = [14, 0, 1], sizes = [1, 3, 34], strides = [1, 1, 1]} : vector<18x3x36xf32> to vector<1x3x34xf32>
      %264 = vector.shape_cast %263 : vector<1x3x34xf32> to vector<3x34xf32>
      %265 = vector.extract_strided_slice %7 {offsets = [14, 0, 2], sizes = [1, 3, 34], strides = [1, 1, 1]} : vector<18x3x36xf32> to vector<1x3x34xf32>
      %266 = vector.shape_cast %265 : vector<1x3x34xf32> to vector<3x34xf32>
      %267 = vector.extract_strided_slice %7 {offsets = [15, 0, 0], sizes = [1, 3, 34], strides = [1, 1, 1]} : vector<18x3x36xf32> to vector<1x3x34xf32>
      %268 = vector.shape_cast %267 : vector<1x3x34xf32> to vector<3x34xf32>
      %269 = vector.extract_strided_slice %7 {offsets = [15, 0, 1], sizes = [1, 3, 34], strides = [1, 1, 1]} : vector<18x3x36xf32> to vector<1x3x34xf32>
      %270 = vector.shape_cast %269 : vector<1x3x34xf32> to vector<3x34xf32>
      %271 = vector.extract_strided_slice %7 {offsets = [15, 0, 2], sizes = [1, 3, 34], strides = [1, 1, 1]} : vector<18x3x36xf32> to vector<1x3x34xf32>
      %272 = vector.shape_cast %271 : vector<1x3x34xf32> to vector<3x34xf32>
      %273 = tpu.concatenate %256, %258, %260, %262, %264, %266, %268, %270, %272 in 0 : vector<3x34xf32>, vector<3x34xf32>, vector<3x34xf32>, vector<3x34xf32>, vector<3x34xf32>, vector<3x34xf32>, vector<3x34xf32>, vector<3x34xf32>, vector<3x34xf32> -> vector<27x34xf32>
      %274 = vector.extract_strided_slice %7 {offsets = [14, 0, 0], sizes = [1, 3, 34], strides = [1, 1, 1]} : vector<18x3x36xf32> to vector<1x3x34xf32>
      %275 = vector.shape_cast %274 : vector<1x3x34xf32> to vector<3x34xf32>
      %276 = vector.extract_strided_slice %7 {offsets = [14, 0, 1], sizes = [1, 3, 34], strides = [1, 1, 1]} : vector<18x3x36xf32> to vector<1x3x34xf32>
      %277 = vector.shape_cast %276 : vector<1x3x34xf32> to vector<3x34xf32>
      %278 = vector.extract_strided_slice %7 {offsets = [14, 0, 2], sizes = [1, 3, 34], strides = [1, 1, 1]} : vector<18x3x36xf32> to vector<1x3x34xf32>
      %279 = vector.shape_cast %278 : vector<1x3x34xf32> to vector<3x34xf32>
      %280 = vector.extract_strided_slice %7 {offsets = [15, 0, 0], sizes = [1, 3, 34], strides = [1, 1, 1]} : vector<18x3x36xf32> to vector<1x3x34xf32>
      %281 = vector.shape_cast %280 : vector<1x3x34xf32> to vector<3x34xf32>
      %282 = vector.extract_strided_slice %7 {offsets = [15, 0, 1], sizes = [1, 3, 34], strides = [1, 1, 1]} : vector<18x3x36xf32> to vector<1x3x34xf32>
      %283 = vector.shape_cast %282 : vector<1x3x34xf32> to vector<3x34xf32>
      %284 = vector.extract_strided_slice %7 {offsets = [15, 0, 2], sizes = [1, 3, 34], strides = [1, 1, 1]} : vector<18x3x36xf32> to vector<1x3x34xf32>
      %285 = vector.shape_cast %284 : vector<1x3x34xf32> to vector<3x34xf32>
      %286 = vector.extract_strided_slice %7 {offsets = [16, 0, 0], sizes = [1, 3, 34], strides = [1, 1, 1]} : vector<18x3x36xf32> to vector<1x3x34xf32>
      %287 = vector.shape_cast %286 : vector<1x3x34xf32> to vector<3x34xf32>
      %288 = vector.extract_strided_slice %7 {offsets = [16, 0, 1], sizes = [1, 3, 34], strides = [1, 1, 1]} : vector<18x3x36xf32> to vector<1x3x34xf32>
      %289 = vector.shape_cast %288 : vector<1x3x34xf32> to vector<3x34xf32>
      %290 = vector.extract_strided_slice %7 {offsets = [16, 0, 2], sizes = [1, 3, 34], strides = [1, 1, 1]} : vector<18x3x36xf32> to vector<1x3x34xf32>
      %291 = vector.shape_cast %290 : vector<1x3x34xf32> to vector<3x34xf32>
      %292 = tpu.concatenate %275, %277, %279, %281, %283, %285, %287, %289, %291 in 0 : vector<3x34xf32>, vector<3x34xf32>, vector<3x34xf32>, vector<3x34xf32>, vector<3x34xf32>, vector<3x34xf32>, vector<3x34xf32>, vector<3x34xf32>, vector<3x34xf32> -> vector<27x34xf32>
      %293 = vector.extract_strided_slice %7 {offsets = [15, 0, 0], sizes = [1, 3, 34], strides = [1, 1, 1]} : vector<18x3x36xf32> to vector<1x3x34xf32>
      %294 = vector.shape_cast %293 : vector<1x3x34xf32> to vector<3x34xf32>
      %295 = vector.extract_strided_slice %7 {offsets = [15, 0, 1], sizes = [1, 3, 34], strides = [1, 1, 1]} : vector<18x3x36xf32> to vector<1x3x34xf32>
      %296 = vector.shape_cast %295 : vector<1x3x34xf32> to vector<3x34xf32>
      %297 = vector.extract_strided_slice %7 {offsets = [15, 0, 2], sizes = [1, 3, 34], strides = [1, 1, 1]} : vector<18x3x36xf32> to vector<1x3x34xf32>
      %298 = vector.shape_cast %297 : vector<1x3x34xf32> to vector<3x34xf32>
      %299 = vector.extract_strided_slice %7 {offsets = [16, 0, 0], sizes = [1, 3, 34], strides = [1, 1, 1]} : vector<18x3x36xf32> to vector<1x3x34xf32>
      %300 = vector.shape_cast %299 : vector<1x3x34xf32> to vector<3x34xf32>
      %301 = vector.extract_strided_slice %7 {offsets = [16, 0, 1], sizes = [1, 3, 34], strides = [1, 1, 1]} : vector<18x3x36xf32> to vector<1x3x34xf32>
      %302 = vector.shape_cast %301 : vector<1x3x34xf32> to vector<3x34xf32>
      %303 = vector.extract_strided_slice %7 {offsets = [16, 0, 2], sizes = [1, 3, 34], strides = [1, 1, 1]} : vector<18x3x36xf32> to vector<1x3x34xf32>
      %304 = vector.shape_cast %303 : vector<1x3x34xf32> to vector<3x34xf32>
      %305 = vector.extract_strided_slice %7 {offsets = [17, 0, 0], sizes = [1, 3, 34], strides = [1, 1, 1]} : vector<18x3x36xf32> to vector<1x3x34xf32>
      %306 = vector.shape_cast %305 : vector<1x3x34xf32> to vector<3x34xf32>
      %307 = vector.extract_strided_slice %7 {offsets = [17, 0, 1], sizes = [1, 3, 34], strides = [1, 1, 1]} : vector<18x3x36xf32> to vector<1x3x34xf32>
      %308 = vector.shape_cast %307 : vector<1x3x34xf32> to vector<3x34xf32>
      %309 = vector.extract_strided_slice %7 {offsets = [17, 0, 2], sizes = [1, 3, 34], strides = [1, 1, 1]} : vector<18x3x36xf32> to vector<1x3x34xf32>
      %310 = vector.shape_cast %309 : vector<1x3x34xf32> to vector<3x34xf32>
      %311 = tpu.concatenate %294, %296, %298, %300, %302, %304, %306, %308, %310 in 0 : vector<3x34xf32>, vector<3x34xf32>, vector<3x34xf32>, vector<3x34xf32>, vector<3x34xf32>, vector<3x34xf32>, vector<3x34xf32>, vector<3x34xf32>, vector<3x34xf32> -> vector<27x34xf32>
      %312 = tpu.concatenate %26, %45, %64, %83, %102, %121, %140, %159, %178, %197, %216, %235, %254, %273, %292, %311 in 1 : vector<27x34xf32>, vector<27x34xf32>, vector<27x34xf32>, vector<27x34xf32>, vector<27x34xf32>, vector<27x34xf32>, vector<27x34xf32>, vector<27x34xf32>, vector<27x34xf32>, vector<27x34xf32>, vector<27x34xf32>, vector<27x34xf32>, vector<27x34xf32>, vector<27x34xf32>, vector<27x34xf32>, vector<27x34xf32> -> vector<27x544xf32>
      %cst = arith.constant dense<0.000000e+00> : vector<5x544xf32>
      %313 = tpu.matmul %0, %312, %cst {dimension_numbers = #tpu.dot_dimension_numbers<[1], [0], [0], [1], [0, 0, 1, 1], [], []>} : vector<5x27xf32>, vector<27x544xf32>, vector<5x544xf32> -> vector<5x544xf32>
      %314 = vector.broadcast %1 : vector<5x1xf32> to vector<5x544xf32>
      %315 = arith.addf %313, %314 : vector<5x544xf32>
      %316 = vector.extract_strided_slice %315 {offsets = [0, 0], sizes = [5, 34], strides = [1, 1]} : vector<5x544xf32> to vector<5x34xf32>
      %c0_i32_7 = arith.constant 0 : i32
      %317 = arith.addi %4, %c0_i32_7 : i32
      %c0_8 = arith.constant 0 : index
      %318 = arith.index_cast %317 : i32 to index
      %c0_9 = arith.constant 0 : index
      %c0_10 = arith.constant 0 : index
      %319 = vector.load %arg4[%c0_8, %318, %c0_9, %c0_10] : memref<1x38x5x34xf32, #tpu.memory_space<vmem>>, vector<1x1x5x34xf32>
      %320 = vector.shape_cast %319 : vector<1x1x5x34xf32> to vector<5x34xf32>
      %321 = vector.shape_cast %316 : vector<5x34xf32> to vector<1x1x5x34xf32>
      tpu.vector_store %arg4[%c0_8, %318, %c0_9, %c0_10], %321 {strides = array<i32>} : memref<1x38x5x34xf32, #tpu.memory_space<vmem>>, vector<1x1x5x34xf32>,
      %322 = vector.extract_strided_slice %315 {offsets = [0, 34], sizes = [5, 34], strides = [1, 1]} : vector<5x544xf32> to vector<5x34xf32>
      %c1_i32_11 = arith.constant 1 : i32
      %323 = arith.addi %4, %c1_i32_11 : i32
      %c0_12 = arith.constant 0 : index
      %324 = arith.index_cast %323 : i32 to index
      %c0_13 = arith.constant 0 : index
      %c0_14 = arith.constant 0 : index
      %325 = vector.load %arg4[%c0_12, %324, %c0_13, %c0_14] : memref<1x38x5x34xf32, #tpu.memory_space<vmem>>, vector<1x1x5x34xf32>
      %326 = vector.shape_cast %325 : vector<1x1x5x34xf32> to vector<5x34xf32>
      %327 = vector.shape_cast %322 : vector<5x34xf32> to vector<1x1x5x34xf32>
      tpu.vector_store %arg4[%c0_12, %324, %c0_13, %c0_14], %327 {strides = array<i32>} : memref<1x38x5x34xf32, #tpu.memory_space<vmem>>, vector<1x1x5x34xf32>,
      %328 = vector.extract_strided_slice %315 {offsets = [0, 68], sizes = [5, 34], strides = [1, 1]} : vector<5x544xf32> to vector<5x34xf32>
      %c2_i32 = arith.constant 2 : i32
      %329 = arith.addi %4, %c2_i32 : i32
      %c0_15 = arith.constant 0 : index
      %330 = arith.index_cast %329 : i32 to index
      %c0_16 = arith.constant 0 : index
      %c0_17 = arith.constant 0 : index
      %331 = vector.load %arg4[%c0_15, %330, %c0_16, %c0_17] : memref<1x38x5x34xf32, #tpu.memory_space<vmem>>, vector<1x1x5x34xf32>
      %332 = vector.shape_cast %331 : vector<1x1x5x34xf32> to vector<5x34xf32>
      %333 = vector.shape_cast %328 : vector<5x34xf32> to vector<1x1x5x34xf32>
      tpu.vector_store %arg4[%c0_15, %330, %c0_16, %c0_17], %333 {strides = array<i32>} : memref<1x38x5x34xf32, #tpu.memory_space<vmem>>, vector<1x1x5x34xf32>,
      %334 = vector.extract_strided_slice %315 {offsets = [0, 102], sizes = [5, 34], strides = [1, 1]} : vector<5x544xf32> to vector<5x34xf32>
      %c3_i32_18 = arith.constant 3 : i32
      %335 = arith.addi %4, %c3_i32_18 : i32
      %c0_19 = arith.constant 0 : index
      %336 = arith.index_cast %335 : i32 to index
      %c0_20 = arith.constant 0 : index
      %c0_21 = arith.constant 0 : index
      %337 = vector.load %arg4[%c0_19, %336, %c0_20, %c0_21] : memref<1x38x5x34xf32, #tpu.memory_space<vmem>>, vector<1x1x5x34xf32>
      %338 = vector.shape_cast %337 : vector<1x1x5x34xf32> to vector<5x34xf32>
      %339 = vector.shape_cast %334 : vector<5x34xf32> to vector<1x1x5x34xf32>
      tpu.vector_store %arg4[%c0_19, %336, %c0_20, %c0_21], %339 {strides = array<i32>} : memref<1x38x5x34xf32, #tpu.memory_space<vmem>>, vector<1x1x5x34xf32>,
      %340 = vector.extract_strided_slice %315 {offsets = [0, 136], sizes = [5, 34], strides = [1, 1]} : vector<5x544xf32> to vector<5x34xf32>
      %c4_i32 = arith.constant 4 : i32
      %341 = arith.addi %4, %c4_i32 : i32
      %c0_22 = arith.constant 0 : index
      %342 = arith.index_cast %341 : i32 to index
      %c0_23 = arith.constant 0 : index
      %c0_24 = arith.constant 0 : index
      %343 = vector.load %arg4[%c0_22, %342, %c0_23, %c0_24] : memref<1x38x5x34xf32, #tpu.memory_space<vmem>>, vector<1x1x5x34xf32>
      %344 = vector.shape_cast %343 : vector<1x1x5x34xf32> to vector<5x34xf32>
      %345 = vector.shape_cast %340 : vector<5x34xf32> to vector<1x1x5x34xf32>
      tpu.vector_store %arg4[%c0_22, %342, %c0_23, %c0_24], %345 {strides = array<i32>} : memref<1x38x5x34xf32, #tpu.memory_space<vmem>>, vector<1x1x5x34xf32>,
      %346 = vector.extract_strided_slice %315 {offsets = [0, 170], sizes = [5, 34], strides = [1, 1]} : vector<5x544xf32> to vector<5x34xf32>
      %c5_i32 = arith.constant 5 : i32
      %347 = arith.addi %4, %c5_i32 : i32
      %c0_25 = arith.constant 0 : index
      %348 = arith.index_cast %347 : i32 to index
      %c0_26 = arith.constant 0 : index
      %c0_27 = arith.constant 0 : index
      %349 = vector.load %arg4[%c0_25, %348, %c0_26, %c0_27] : memref<1x38x5x34xf32, #tpu.memory_space<vmem>>, vector<1x1x5x34xf32>
      %350 = vector.shape_cast %349 : vector<1x1x5x34xf32> to vector<5x34xf32>
      %351 = vector.shape_cast %346 : vector<5x34xf32> to vector<1x1x5x34xf32>
      tpu.vector_store %arg4[%c0_25, %348, %c0_26, %c0_27], %351 {strides = array<i32>} : memref<1x38x5x34xf32, #tpu.memory_space<vmem>>, vector<1x1x5x34xf32>,
      %352 = vector.extract_strided_slice %315 {offsets = [0, 204], sizes = [5, 34], strides = [1, 1]} : vector<5x544xf32> to vector<5x34xf32>
      %c6_i32 = arith.constant 6 : i32
      %353 = arith.addi %4, %c6_i32 : i32
      %c0_28 = arith.constant 0 : index
      %354 = arith.index_cast %353 : i32 to index
      %c0_29 = arith.constant 0 : index
      %c0_30 = arith.constant 0 : index
      %355 = vector.load %arg4[%c0_28, %354, %c0_29, %c0_30] : memref<1x38x5x34xf32, #tpu.memory_space<vmem>>, vector<1x1x5x34xf32>
      %356 = vector.shape_cast %355 : vector<1x1x5x34xf32> to vector<5x34xf32>
      %357 = vector.shape_cast %352 : vector<5x34xf32> to vector<1x1x5x34xf32>
      tpu.vector_store %arg4[%c0_28, %354, %c0_29, %c0_30], %357 {strides = array<i32>} : memref<1x38x5x34xf32, #tpu.memory_space<vmem>>, vector<1x1x5x34xf32>,
      %358 = vector.extract_strided_slice %315 {offsets = [0, 238], sizes = [5, 34], strides = [1, 1]} : vector<5x544xf32> to vector<5x34xf32>
      %c7_i32 = arith.constant 7 : i32
      %359 = arith.addi %4, %c7_i32 : i32
      %c0_31 = arith.constant 0 : index
      %360 = arith.index_cast %359 : i32 to index
      %c0_32 = arith.constant 0 : index
      %c0_33 = arith.constant 0 : index
      %361 = vector.load %arg4[%c0_31, %360, %c0_32, %c0_33] : memref<1x38x5x34xf32, #tpu.memory_space<vmem>>, vector<1x1x5x34xf32>
      %362 = vector.shape_cast %361 : vector<1x1x5x34xf32> to vector<5x34xf32>
      %363 = vector.shape_cast %358 : vector<5x34xf32> to vector<1x1x5x34xf32>
      tpu.vector_store %arg4[%c0_31, %360, %c0_32, %c0_33], %363 {strides = array<i32>} : memref<1x38x5x34xf32, #tpu.memory_space<vmem>>, vector<1x1x5x34xf32>,
      %364 = vector.extract_strided_slice %315 {offsets = [0, 272], sizes = [5, 34], strides = [1, 1]} : vector<5x544xf32> to vector<5x34xf32>
      %c8_i32 = arith.constant 8 : i32
      %365 = arith.addi %4, %c8_i32 : i32
      %c0_34 = arith.constant 0 : index
      %366 = arith.index_cast %365 : i32 to index
      %c0_35 = arith.constant 0 : index
      %c0_36 = arith.constant 0 : index
      %367 = vector.load %arg4[%c0_34, %366, %c0_35, %c0_36] : memref<1x38x5x34xf32, #tpu.memory_space<vmem>>, vector<1x1x5x34xf32>
      %368 = vector.shape_cast %367 : vector<1x1x5x34xf32> to vector<5x34xf32>
      %369 = vector.shape_cast %364 : vector<5x34xf32> to vector<1x1x5x34xf32>
      tpu.vector_store %arg4[%c0_34, %366, %c0_35, %c0_36], %369 {strides = array<i32>} : memref<1x38x5x34xf32, #tpu.memory_space<vmem>>, vector<1x1x5x34xf32>,
      %370 = vector.extract_strided_slice %315 {offsets = [0, 306], sizes = [5, 34], strides = [1, 1]} : vector<5x544xf32> to vector<5x34xf32>
      %c9_i32 = arith.constant 9 : i32
      %371 = arith.addi %4, %c9_i32 : i32
      %c0_37 = arith.constant 0 : index
      %372 = arith.index_cast %371 : i32 to index
      %c0_38 = arith.constant 0 : index
      %c0_39 = arith.constant 0 : index
      %373 = vector.load %arg4[%c0_37, %372, %c0_38, %c0_39] : memref<1x38x5x34xf32, #tpu.memory_space<vmem>>, vector<1x1x5x34xf32>
      %374 = vector.shape_cast %373 : vector<1x1x5x34xf32> to vector<5x34xf32>
      %375 = vector.shape_cast %370 : vector<5x34xf32> to vector<1x1x5x34xf32>
      tpu.vector_store %arg4[%c0_37, %372, %c0_38, %c0_39], %375 {strides = array<i32>} : memref<1x38x5x34xf32, #tpu.memory_space<vmem>>, vector<1x1x5x34xf32>,
      %376 = vector.extract_strided_slice %315 {offsets = [0, 340], sizes = [5, 34], strides = [1, 1]} : vector<5x544xf32> to vector<5x34xf32>
      %c10_i32 = arith.constant 10 : i32
      %377 = arith.addi %4, %c10_i32 : i32
      %c0_40 = arith.constant 0 : index
      %378 = arith.index_cast %377 : i32 to index
      %c0_41 = arith.constant 0 : index
      %c0_42 = arith.constant 0 : index
      %379 = vector.load %arg4[%c0_40, %378, %c0_41, %c0_42] : memref<1x38x5x34xf32, #tpu.memory_space<vmem>>, vector<1x1x5x34xf32>
      %380 = vector.shape_cast %379 : vector<1x1x5x34xf32> to vector<5x34xf32>
      %381 = vector.shape_cast %376 : vector<5x34xf32> to vector<1x1x5x34xf32>
      tpu.vector_store %arg4[%c0_40, %378, %c0_41, %c0_42], %381 {strides = array<i32>} : memref<1x38x5x34xf32, #tpu.memory_space<vmem>>, vector<1x1x5x34xf32>,
      %382 = vector.extract_strided_slice %315 {offsets = [0, 374], sizes = [5, 34], strides = [1, 1]} : vector<5x544xf32> to vector<5x34xf32>
      %c11_i32 = arith.constant 11 : i32
      %383 = arith.addi %4, %c11_i32 : i32
      %c0_43 = arith.constant 0 : index
      %384 = arith.index_cast %383 : i32 to index
      %c0_44 = arith.constant 0 : index
      %c0_45 = arith.constant 0 : index
      %385 = vector.load %arg4[%c0_43, %384, %c0_44, %c0_45] : memref<1x38x5x34xf32, #tpu.memory_space<vmem>>, vector<1x1x5x34xf32>
      %386 = vector.shape_cast %385 : vector<1x1x5x34xf32> to vector<5x34xf32>
      %387 = vector.shape_cast %382 : vector<5x34xf32> to vector<1x1x5x34xf32>
      tpu.vector_store %arg4[%c0_43, %384, %c0_44, %c0_45], %387 {strides = array<i32>} : memref<1x38x5x34xf32, #tpu.memory_space<vmem>>, vector<1x1x5x34xf32>,
      %388 = vector.extract_strided_slice %315 {offsets = [0, 408], sizes = [5, 34], strides = [1, 1]} : vector<5x544xf32> to vector<5x34xf32>
      %c12_i32 = arith.constant 12 : i32
      %389 = arith.addi %4, %c12_i32 : i32
      %c0_46 = arith.constant 0 : index
      %390 = arith.index_cast %389 : i32 to index
      %c0_47 = arith.constant 0 : index
      %c0_48 = arith.constant 0 : index
      %391 = vector.load %arg4[%c0_46, %390, %c0_47, %c0_48] : memref<1x38x5x34xf32, #tpu.memory_space<vmem>>, vector<1x1x5x34xf32>
      %392 = vector.shape_cast %391 : vector<1x1x5x34xf32> to vector<5x34xf32>
      %393 = vector.shape_cast %388 : vector<5x34xf32> to vector<1x1x5x34xf32>
      tpu.vector_store %arg4[%c0_46, %390, %c0_47, %c0_48], %393 {strides = array<i32>} : memref<1x38x5x34xf32, #tpu.memory_space<vmem>>, vector<1x1x5x34xf32>,
      %394 = vector.extract_strided_slice %315 {offsets = [0, 442], sizes = [5, 34], strides = [1, 1]} : vector<5x544xf32> to vector<5x34xf32>
      %c13_i32 = arith.constant 13 : i32
      %395 = arith.addi %4, %c13_i32 : i32
      %c0_49 = arith.constant 0 : index
      %396 = arith.index_cast %395 : i32 to index
      %c0_50 = arith.constant 0 : index
      %c0_51 = arith.constant 0 : index
      %397 = vector.load %arg4[%c0_49, %396, %c0_50, %c0_51] : memref<1x38x5x34xf32, #tpu.memory_space<vmem>>, vector<1x1x5x34xf32>
      %398 = vector.shape_cast %397 : vector<1x1x5x34xf32> to vector<5x34xf32>
      %399 = vector.shape_cast %394 : vector<5x34xf32> to vector<1x1x5x34xf32>
      tpu.vector_store %arg4[%c0_49, %396, %c0_50, %c0_51], %399 {strides = array<i32>} : memref<1x38x5x34xf32, #tpu.memory_space<vmem>>, vector<1x1x5x34xf32>,
      %400 = vector.extract_strided_slice %315 {offsets = [0, 476], sizes = [5, 34], strides = [1, 1]} : vector<5x544xf32> to vector<5x34xf32>
      %c14_i32 = arith.constant 14 : i32
      %401 = arith.addi %4, %c14_i32 : i32
      %c0_52 = arith.constant 0 : index
      %402 = arith.index_cast %401 : i32 to index
      %c0_53 = arith.constant 0 : index
      %c0_54 = arith.constant 0 : index
      %403 = vector.load %arg4[%c0_52, %402, %c0_53, %c0_54] : memref<1x38x5x34xf32, #tpu.memory_space<vmem>>, vector<1x1x5x34xf32>
      %404 = vector.shape_cast %403 : vector<1x1x5x34xf32> to vector<5x34xf32>
      %405 = vector.shape_cast %400 : vector<5x34xf32> to vector<1x1x5x34xf32>
      tpu.vector_store %arg4[%c0_52, %402, %c0_53, %c0_54], %405 {strides = array<i32>} : memref<1x38x5x34xf32, #tpu.memory_space<vmem>>, vector<1x1x5x34xf32>,
      %406 = vector.extract_strided_slice %315 {offsets = [0, 510], sizes = [5, 34], strides = [1, 1]} : vector<5x544xf32> to vector<5x34xf32>
      %c15_i32 = arith.constant 15 : i32
      %407 = arith.addi %4, %c15_i32 : i32
      %c0_55 = arith.constant 0 : index
      %408 = arith.index_cast %407 : i32 to index
      %c0_56 = arith.constant 0 : index
      %c0_57 = arith.constant 0 : index
      %409 = vector.load %arg4[%c0_55, %408, %c0_56, %c0_57] : memref<1x38x5x34xf32, #tpu.memory_space<vmem>>, vector<1x1x5x34xf32>
      %410 = vector.shape_cast %409 : vector<1x1x5x34xf32> to vector<5x34xf32>
      %411 = vector.shape_cast %406 : vector<5x34xf32> to vector<1x1x5x34xf32>
      tpu.vector_store %arg4[%c0_55, %408, %c0_56, %c0_57], %411 {strides = array<i32>} : memref<1x38x5x34xf32, #tpu.memory_space<vmem>>, vector<1x1x5x34xf32>,
    }
    %c3_i32_3 = arith.constant 3 : i32
    return
  }
  func.func @transform_0(%arg0: i32) -> (i32, i32, i32, i32) {
    %c0_i32 = arith.constant 0 : i32
    %c0_i32_0 = arith.constant 0 : i32
    %c0_i32_1 = arith.constant 0 : i32
    %c0_i32_2 = arith.constant 0 : i32
    return %arg0, %c0_i32, %c0_i32_0, %c0_i32_1 : i32, i32, i32, i32
  }
  func.func @transform_1(%arg0: i32) -> (i32, i32) {
    %c0_i32 = arith.constant 0 : i32
    %c0_i32_0 = arith.constant 0 : i32
    %c0_i32_1 = arith.constant 0 : i32
    return %c0_i32, %c0_i32_0 : i32, i32
  }
  func.func @transform_2(%arg0: i32) -> (i32, i32) {
    %c0_i32 = arith.constant 0 : i32
    %c0_i32_0 = arith.constant 0 : i32
    %c0_i32_1 = arith.constant 0 : i32
    return %c0_i32, %c0_i32_0 : i32, i32
  }
  func.func @transform_3(%arg0: i32) -> (i32, i32, i32, i32) {
    %c0_i32 = arith.constant 0 : i32
    %c0_i32_0 = arith.constant 0 : i32
    %c0_i32_1 = arith.constant 0 : i32
    %c0_i32_2 = arith.constant 0 : i32
    return %arg0, %c0_i32, %c0_i32_0, %c0_i32_1 : i32, i32, i32, i32
  }
}

</mosaic_0001>

<bundles_post_ra>
// kernel: tpu_custom_call.1
= control target key start
LH: loop header
LB: loop body
LE: loop exit
PB: predicated region body
PF: predicated region fallthrough
CT: control target
= control target key end

     0   :  { %s2142_s12 = smov 0   ;;  %s3031_s0 = inlined_call_operand.vmem [shape: f32[2,40,3,36], index: 0, kind: input, shape index: {}]   ;;  %s3032_s1 = inlined_call_operand.vmem [shape: f32[5,27], index: 1, kind: input, shape index: {}]   ;;  %s3033_s2 = inlined_call_operand.vmem [shape: f32[5,1], index: 2, kind: input, shape index: {}]   ;;  %s3034_s3 = inlined_call_operand.vmem [shape: f32[2,38,5,34], index: 3, kind: output, shape index: {}]  }
   0x1 LB: > { %s1530_s13 = sadd.s32 4294967295, %s2080_s12   ;;  %p1534_p0 = scmp.ge.s32.totalorder %s2080_s12, 1  ;;  %s2080_s12 = sphi %s2142_s12, %s13_s12  }
   0x2   : > { %p137_p1 = scmp.lt.s32.totalorder %s2080_s12, 3 }
   0x4   : > { %p138_p2 = pnand %p1534_p0, %p137_p1 }
   0x5   : > { %p161_p3 = scmp.lt.s32.totalorder (!%p138_p2), %s1530_s13, 1  ;;  %v2153_v0 = vld [vmem:[%s3032_s1] sm:$0x1f] (!%p138_p2)  ;;  %s2170_s26 = smov (!%p138_p2), 0  }
   0x6   : > { %141 = sbr.rel (%p138_p2) target bundleno = 738 (0x2e2), region = 32  ;;  %3044 = vst [vmem:[#allocation2_spill] sm:$0xff] (!%p138_p2), %v2153_v0  ;;  %v2158_v1 = vld [vmem:[%s3033_s2] sm:$0x1f] (!%p138_p2) }
   0x7   : > { %3045 = vst [vmem:[#allocation3_spill] sm:$0xff] (!%p138_p2), %v2158_v1 }
   0xd   : > { %s3074_s13 = smov (!%p161_p3, %s1530_s13), 1 }
   0xe   : > { %s1623_s18 = smul.u32 160, %s3074_s13 }
   0xf   : > { %s1624_s19 = smul.u32 304, %s3074_s13 }
  0x10   : > { %s2163_s22 = scalar_lea.vmem %s3031_s0, %s1623_s18 }
  0x11   : > { %s2168_s25 = scalar_lea.vmem %s3034_s3, %s1624_s19 }
  0x12 LB: >> { %s1537_s27 = sshll.u32 %s2084_s26, 4  ;;  %s2086_s30 = smov 127   ;;  %vm242_vm0 = vcmask 1041408   ;;  %vm244_vm1 = vcmask 1044480   ;;  %vm232_vm2 = vcmask 1042432   ;;  %vm236_vm3 = vcmask 1040384   ;;  %s2084_s26 = sphi %s2170_s26, %s178_s26  }
  0x13   : >> { %p180_p4 = scmp.lt.s32.totalorder %s1537_s27, 22  ;;  %s2087_s4 = smov 126   ;;  %vm238_vm4 = vcmask 1043456   ;;  %vm234_vm5 = vcmask 1045504   ;;  %vm240_vm6 = vcmask 1046528   ;;  %vm996_vm7 = vcmask 64512  }
  0x14   : >> { %s2088_s5 = smov 102   ;;  %s2089_s6 = smov 8   ;;  %vm1001_vm8 = vcmask 343040   ;;  %vm1006_vm9 = vcmask 621568   ;;  %vm981_vm10 = vcmask 277504   ;;  %vm986_vm11 = vcmask 556032  }
  0x15   : >> { %s3076_s27 = smov (!%p180_p4, %s1537_s27), 22  ;;  %s2090_s7 = smov 42   ;;  %vm1011_vm12 = vcmask 900096   ;;  %vm991_vm13 = vcmask 834560   ;;  %vm2104_vm14 = vmmov 1  }
  0x16   : >> { %s1538_s28 = sshll.u32 %s3076_s27, 2  ;;  %s2091_s8 = smov 76   ;;  %vm2917_vm15 = vmpackc.low %vm232_vm2, %vm2104_vm14  ;;  %vm1415_vm14 = vcmask 15360  }
  0x17   : >> { %s2180_s29 = scalar_lea.vmem %s2163_s22, %s1538_s28  ;;  %s2092_s9 = smov 34  }
  0x18   : >> { %v2183_v2 = vld [vmem:[%s2180_s29 + $0x10] sm:$0x7]  ;;  %v2186_v3 = vld [vmem:[%s2180_s29 + $0x14] sm:$0x7]  ;;  %v2189_v4 = vld [vmem:[%s2180_s29 + $0xc] sm:$0x7] }
  0x19   : >> { %v348_v5 = vrot.slane %v2183_v2, 5  ;;  %v358_v6 = vrot.slane %v2186_v3, 4  ;;  %v318_v7 = vrot.slane %v2189_v4, 2  ;;  %v352_v8 = vrot.slane %v2183_v2, 2  ;;  %v2196_v9 = vld [vmem:[%s2180_s29 + $0x4] sm:$0x7] }
  0x1a   : >> { %v314_v10 = vrot.slane %v2189_v4, 5  ;;  %v324_v11 = vrot.slane %v2183_v2, 4  ;;  %v250_v12 = vrot.slane %v2196_v9, 2  ;;  %v386_v13 = vrot.slane %v2186_v3, 2  ;;  %v2203_v14 = vld [vmem:[%s2180_s29 + $0x18] sm:$0x7] }
  0x1b   : >> { %v1687_v15 = vpack.i.bf16 %v358_v6, %v348_v5  ;;  %v1677_v16 = vpack.i.bf16 %v352_v8, %v318_v7  ;;  %v328_v17 = vrot.slane %v2183_v2, 1  ;;  %v362_v18 = vrot.slane %v2186_v3, 1  ;;  %v2212_v23 = vld [vmem:[%s2180_s29 + $0x8] sm:$0x7]  ;;  %v2221_v30 = vld [vmem:[%s2180_s29 + $0x1c] sm:$0x7] }
  0x1c   : >> { %v1682_v19 = vpack.i.bf16 %v324_v11, %v314_v10  ;;  %v1692_v20 = vpack.i.bf16 %v250_v12, %v386_v13  ;;  %v382_v21 = vrot.slane %v2186_v3, 5  ;;  %v392_v22 = vrot.slane %v2203_v14, 4  ;;  %v2236_v43 = vld [vmem:[%s2180_s29 + $0x20] sm:$0x7]  ;;  %v2249_v54 = vld [vmem:[%s2180_s29 + $0x2c] sm:$0x7] }
  0x1d   : >> { %1688 = vrot.lane.b32.xlu1 %v1687_v15, %s2086_s30  ;;  %1678 = vrot.lane.b32.xlu0 %v1677_v16, %s2087_s4  ;;  %v1697_v24 = vpack.i.bf16 %v362_v18, %v328_v17  ;;  %v284_v25 = vrot.slane %v2212_v23, 2  ;;  %v420_v27 = vrot.slane %v2203_v14, 2  ;;  %v246_v28 = vrot.slane %v2196_v9, 5  ;;  %v2252_v55 = vld [vmem:[%s2180_s29 + $0x30] sm:$0x7]  ;;  %s2093_s10 = smov 110  }
  0x1e   : >> { %v1702_v26 = vpack.i.bf16 %v392_v22, %v382_v21  ;;  %v256_v29 = vrot.slane %v2212_v23, 4  ;;  %v396_v31 = vrot.slane %v2203_v14, 1  ;;  %v454_v32 = vrot.slane %v2221_v30, 2  ;;  %v2268_v8 = vld [vmem:[%s2180_s29 + $0x34] sm:$0x7]  ;;  %s2094_s11 = smov 68  }
  0x1f   : >> { %v1707_v33 = vpack.i.bf16 %v284_v25, %v420_v27  ;;  %v416_v35 = vrot.slane %v2203_v14, 5  ;;  %v426_v36 = vrot.slane %v2221_v30, 4  ;;  %v260_v38 = vrot.slane %v2212_v23, 1  ;;  %v2278_v17 = vld [vmem:[%s2180_s29 + $0x24] sm:$0x7]  ;;  %s2095_s13 = smov 24  }
  0x20   : >> { %v1712_v34 = vpack.i.bf16 %v256_v29, %v246_v28  ;;  %v1717_v37 = vpack.i.bf16 %v454_v32, %v396_v31  ;;  %v430_v40 = vrot.slane %v2221_v30, 1  ;;  %v280_v41 = vrot.slane %v2212_v23, 5  ;;  %v2293_v29 = vld [vmem:[%s2180_s29 + $0x38] sm:$0x7]  ;;  %s2097_s14 = smov 58   ;;  %s2098_s15 = smov 118  }
  0x21   : >> { %1683 = vrot.lane.b32.xlu0 %v1682_v19, %s2086_s30  ;;  %1693 = vrot.lane.b32.xlu1 %v1692_v20, %s2087_s4  ;;  %v1722_v39 = vpack.i.bf16 %v426_v36, %v416_v35  ;;  %v290_v42 = vrot.slane %v2189_v4, 4  ;;  %v450_v44 = vrot.slane %v2221_v30, 5  ;;  %v460_v45 = vrot.slane %v2236_v43, 4  ;;  %s2099_s16 = smov 92   ;;  %s2100_s17 = smov 16  }
  0x22   : >> { %v1727_v46 = vpack.i.bf16 %v430_v40, %v260_v38  ;;  %v294_v48 = vrot.slane %v2189_v4, 1  ;;  %v464_v49 = vrot.slane %v2236_v43, 1  ;;  %v335_v52 = vrot.slane %v2186_v3, 3  ;;  %s2101_s18 = smov 50   ;;  %s2102_s19 = smov 84  }
  0x23   : >> { %v1732_v47 = vpack.i.bf16 %v290_v42, %v280_v41  ;;  %v1737_v50 = vpack.i.bf16 %v460_v45, %v450_v44  ;;  %v369_v53 = vrot.slane %v2203_v14, 3  ;;  %v1752_v56 = vpack.i.bf16 %v2203_v14, %v2186_v3  ;;  %v2306_v41 = vld [vmem:[%s2180_s29 + $0x28] sm:$0x7]  ;;  %s1547_s20 = sshll.u32 %s3076_s27, 3  ;;  %s2107_s23 = smov 26  }
  0x24   : >> { %v1742_v51 = vpack.i.bf16 %v464_v49, %v294_v48  ;;  %v267_v57 = vrot.slane %v2189_v4, 3  ;;  %v403_v59 = vrot.slane %v2221_v30, 3  ;;  %v590_v60 = vrot.slane %v2249_v54, 2  ;;  %v2317_v49 = vld [vmem:[%s2180_s29 + $0x3c] sm:$0x7]  ;;  %s2991_s21 = scalar_lea.vmem %s2168_s25, %s1547_s20  ;;  %s2108_s24 = smov 10  }
  0x25   : >> { %1698 = vrot.lane.b32.xlu0 %v1697_v24, %s2087_s4  ;;  %1703 = vrot.lane.b32.xlu1 %v1702_v26, %s2086_s30  ;;  %v1747_v58 = vpack.i.bf16 %v369_v53, %v335_v52  ;;  %v624_v61 = vrot.slane %v2252_v55, 2  ;;  %v488_v62 = vrot.slane %v2236_v43, 2  ;;  %v437_v6 = vrot.slane %v2236_v43, 3  ;;  %s2109_s27 = smov 18   ;;  %s2110_s28 = smov 94  }
  0x26   : >> { %v1757_v63 = vpack.i.bf16 %v267_v57, %v403_v59  ;;  %v586_v7 = vrot.slane %v2249_v54, 5  ;;  %v596_v10 = vrot.slane %v2252_v55, 4  ;;  %v620_v11 = vrot.slane %v2252_v55, 5  ;;  %s178_s26 = sadd.s32 1, %s2084_s26  }
  0x27   : >> { %v1762_v5 = vpack.i.bf16 %v624_v61, %v590_v60  ;;  %v1767_v12 = vpack.i.bf16 %v488_v62, %v2221_v30  ;;  %v301_v15 = vrot.slane %v2183_v2, 3  ;;  %v630_v16 = vrot.slane %v2268_v8, 4  ;;  %p175_p5 = scmp.ge.s32.totalorder %s178_s26, 3  }
  0x28   : >> { %v1772_v13 = vpack.i.bf16 %v586_v7, %v437_v6  ;;  %v1777_v18 = vpack.i.bf16 %v620_v11, %v596_v10  ;;  %v658_v20 = vrot.slane %v2268_v8, 2  ;;  %v522_v21 = vrot.slane %v2278_v17, 2 }
  0x29   : >> { %1708 = vrot.lane.b32.xlu0 %v1707_v33, %s2087_s4  ;;  %1713 = vrot.lane.b32.xlu1 %v1712_v34, %s2086_s30  ;;  %v1782_v19 = vpack.i.bf16 %v301_v15, %v630_v16  ;;  %v471_v22 = vrot.slane %v2278_v17, 3  ;;  %v484_v24 = vrot.slane %v2236_v43, 5  ;;  %v494_v27 = vrot.slane %v2278_v17, 4 }
  0x2a   : >> { %v1787_v25 = vpack.i.bf16 %v2189_v4, %v658_v20  ;;  %v1792_v26 = vpack.i.bf16 %v522_v21, %v2236_v43  ;;  %v654_v28 = vrot.slane %v2268_v8, 5  ;;  %v600_v32 = vrot.slane %v2252_v55, 1 }
  0x2b   : >> { %v1797_v31 = vpack.i.bf16 %v484_v24, %v471_v22  ;;  %v634_v34 = vrot.slane %v2268_v8, 1  ;;  %v518_v35 = vrot.slane %v2278_v17, 5  ;;  %v664_v36 = vrot.slane %v2293_v29, 4 }
  0x2c   : >> { %v1802_v33 = vpack.i.bf16 %v654_v28, %v494_v27  ;;  %v498_v40 = vrot.slane %v2278_v17, 1  ;;  %v528_v42 = vrot.slane %v2306_v41, 4  ;;  %v688_v44 = vrot.slane %v2293_v29, 5  ;;  %v2357_v28 = vld [vmem:[%s2180_s29] sm:$0x7] }
  0x2d   : >> { %1718 = vrot.lane.b32.xlu0 %v1717_v37, %s2087_s4  ;;  %1723 = vrot.lane.b32.xlu1 %v1722_v39, %s2086_s30  ;;  %v1807_v37 = vpack.i.bf16 %v634_v34, %v600_v32  ;;  %v1812_v38 = vpack.i.bf16 %v518_v35, %v664_v36  ;;  %v692_v39 = vrot.slane %v2293_v29, 2  ;;  %v668_v48 = vrot.slane %v2293_v29, 1  ;;  %3046 = vst [vmem:[#allocation4_spill] sm:$0xff] %v2357_v28 }
  0x2e   : >> { %v698_v53 = vrot.slane %v2317_v49, 4  ;;  %v726_v57 = vrot.slane %v2317_v49, 2  ;;  %v722_v59 = vrot.slane %v2317_v49, 5  ;;  %v566_v62 = vrot.slane %v2249_v54, 1 }
  0x2f   : >> { %v1817_v45 = vpack.i.bf16 %v2183_v2, %v692_v39  ;;  %v607_v6 = vrot.slane %v2268_v8, 3  ;;  %v505_v16 = vrot.slane %v2306_v41, 3  ;;  %v1872_v20 = vpack.i.bf16 %v2306_v41, %v2293_v29 }
  0x30   : >> { %v539_v21 = vrot.slane %v2249_v54, 3  ;;  %v675_v22 = vrot.slane %v2317_v49, 3  ;;  %v203_v34 = vrot.slane %v2357_v28, 5  ;;  %v207_v36 = vrot.slane %v2357_v28, 2 }
  0x31   : >> { %1728 = vrot.lane.b32.xlu0 %v1727_v46, %s2087_s4  ;;  %1733 = vrot.lane.b32.xlu1 %v1732_v47, %s2086_s30  ;;  %v1822_v46 = vpack.i.bf16 %v498_v40, %v2278_v17  ;;  %v556_v47 = vrot.slane %v2306_v41, 2  ;;  %v225_v40 = vrot.slane %v2212_v23, 3 }
  0x32   : >> { %v1877_v24 = vpack.i.bf16 %v539_v21, %v675_v22 }
  0x33   : >> { %v1832_v52 = vpack.i.bf16 %v668_v48, %v556_v47 }
  0x35   : >> { %1738 = vrot.lane.b32.xlu0 %v1737_v50, %s2086_s30  ;;  %1743 = vrot.lane.b32.xlu1 %v1742_v51, %s2087_s4  ;;  %v1827_v50 = vpack.i.bf16 %v688_v44, %v528_v42  ;;  %v552_v51 = vrot.slane %v2306_v41, 5  ;;  %v218_v42 = vrot.slane %v2196_v9, 1 }
  0x37   : >> { %v1837_v60 = vpack.i.bf16 %v552_v51, %v698_v53 }
  0x39   : >> { %1748 = vrot.lane.b32.xlu0 %v1747_v58, %s2086_s30  ;;  %1753 = vrot.lane.b32.xlu1 %v1752_v56, %s2087_s4  ;;  %v532_v56 = vrot.slane %v2306_v41, 1  ;;  %v562_v58 = vrot.slane %v2249_v54, 4 }
  0x3b   : >> { %v1842_v61 = vpack.i.bf16 %v532_v56, %v726_v57  ;;  %v1847_v7 = vpack.i.bf16 %v722_v59, %v562_v58 }
  0x3d   : >> { %1758 = vrot.lane.b32.xlu0 %v1757_v63, %s2086_s30  ;;  %1763 = vrot.lane.b32.xlu1 %v1762_v5, %s2087_s4  ;;  %v702_v63 = vrot.slane %v2317_v49, 1  ;;  %v2332_v5 = vld [vmem:[%s2180_s29 + $0x40] sm:$0x7] }
  0x3e   : >> { %v732_v11 = vrot.slane %v2332_v5, 4  ;;  %v709_v27 = vrot.slane %v2332_v5, 3  ;;  %v1892_v32 = vpack.i.bf16 %v2252_v55, %v2332_v5 }
  0x3f   : >> { %v1852_v10 = vpack.i.bf16 %v566_v62, %v702_v63  ;;  %v333_v63 = vrot.slane %v2186_v3, 6 }
  0x41   : >> { %1768 = vrot.lane.b32.xlu0 %v1767_v12, %s2087_s4  ;;  %1773 = vrot.lane.b32.xlu1 %v1772_v13, %s2086_s30  ;;  %v736_v12 = vrot.slane %v2332_v5, 1  ;;  %v1857_v13 = vpack.i.bf16 %v607_v6, %v732_v11  ;;  %v367_v6 = vrot.slane %v2203_v14, 6 }
  0x43   : >> { %v1862_v15 = vpack.i.bf16 %v2268_v8, %v736_v12 }
  0x45   : >> { %1778 = vrot.lane.b32.xlu0 %v1777_v18, %s2086_s30  ;;  %1783 = vrot.lane.b32.xlu1 %v1782_v19, %s2086_s30  ;;  %v641_v18 = vrot.slane %v2293_v29, 3 }
  0x47   : >> { %v1867_v19 = vpack.i.bf16 %v505_v16, %v641_v18 }
  0x49   : >> { %1788 = vrot.lane.b32.xlu0 %v1787_v25, %s2087_s4  ;;  %1793 = vrot.lane.b32.xlu1 %v1792_v26, %s2087_s4  ;;  %v1882_v25 = vpack.i.bf16 %v2249_v54, %v2317_v49  ;;  %v573_v26 = vrot.slane %v2252_v55, 3 }
  0x4d   : >> { %1798 = vrot.lane.b32.xlu0 %v1797_v31, %s2086_s30  ;;  %1803 = vrot.lane.b32.xlu1 %v1802_v33, %s2086_s30  ;;  %v2360_v31 = vld [vmem:[%s2180_s29 + $0x44] sm:$0x7]  ;;  %v1887_v33 = vpack.i.bf16 %v573_v26, %v709_v27 }
  0x4e   : >> { %3047 = vst [vmem:[#allocation5_spill] sm:$0xff] %v2360_v31  ;;  %v743_v35 = vrot.slane %v2360_v31, 3  ;;  %v1902_v39 = vpack.i.bf16 %v207_v36, %v2360_v31 }
  0x51   : >> { %1808 = vrot.lane.b32.xlu0 %v1807_v37, %s2087_s4  ;;  %1813 = vrot.lane.b32.xlu1 %v1812_v38, %s2086_s30  ;;  %v214_v37 = vrot.slane %v2196_v9, 4  ;;  %v1897_v38 = vpack.i.bf16 %v203_v34, %v743_v35 }
  0x53   : >> { %v1907_v44 = vpack.i.bf16 %v225_v40, %v214_v37 }
  0x55   : >> { %1818 = vrot.lane.b32.xlu0 %v1817_v45, %s2087_s4  ;;  %1823 = vrot.lane.b32.xlu1 %v1822_v46, %s2087_s4  ;;  %v1912_v45 = vpack.i.bf16 %v2212_v23, %v218_v42  ;;  %v356_v42 = vrot.slane %v2186_v3, 7 }
  0x59   : >> { %1828 = vrot.lane.b32.xlu0 %v1827_v50, %s2086_s30  ;;  %1833 = vrot.lane.b32.xlu1 %v1832_v52, %s2087_s4 }
  0x5d   : >> { %1838 = vrot.lane.b32.xlu0 %v1837_v60, %s2086_s30  ;;  %1843 = vrot.lane.b32.xlu1 %v1842_v61, %s2087_s4 }
  0x61   : >> { %1848 = vrot.lane.b32.xlu0 %v1847_v7, %s2086_s30  ;;  %1853 = vrot.lane.b32.xlu1 %v1852_v10, %s2087_s4 }
  0x65   : >> { %1858 = vrot.lane.b32.xlu0 %v1857_v13, %s2086_s30  ;;  %1863 = vrot.lane.b32.xlu1 %v1862_v15, %s2087_s4 }
  0x69   : >> { %1868 = vrot.lane.b32.xlu0 %v1867_v19, %s2086_s30  ;;  %1873 = vrot.lane.b32.xlu1 %v1872_v20, %s2087_s4 }
  0x6d   : >> { %1878 = vrot.lane.b32.xlu0 %v1877_v24, %s2086_s30  ;;  %1883 = vrot.lane.b32.xlu1 %v1882_v25, %s2087_s4 }
  0x71   : >> { %1888 = vrot.lane.b32.xlu0 %v1887_v33, %s2086_s30  ;;  %1893 = vrot.lane.b32.xlu1 %v1892_v32, %s2087_s4  ;;  %v401_v32 = vrot.slane %v2221_v30, 6 }
  0x75   : >> { %1898 = vrot.lane.b32.xlu0 %v1897_v38, %s2086_s30  ;;  %1903 = vrot.lane.b32.xlu1 %v1902_v39, %s2087_s4  ;;  %v322_v39 = vrot.slane %v2183_v2, 7 }
  0x79   : >> { %1908 = vrot.lane.b32.xlu0 %v1907_v44, %s2086_s30  ;;  %1913 = vrot.lane.b32.xlu1 %v1912_v45, %s2087_s4  ;;  %v390_v45 = vrot.slane %v2203_v14, 7  ;;  %s2112_s30 = smov 78  }
  0x8f   : >> { %v2380_v46 = vpop.permute.xlu1 %1688  ;;  %v2382_v47 = vpop.permute.xlu0 %1678 }
  0x93   : >> { %v2384_v48 = vpop.permute.xlu0 %1683  ;;  %v2386_v50 = vpop.permute.xlu1 %1693 }
  0x97   : >> { %v2388_v51 = vpop.permute.xlu0 %1698  ;;  %v2390_v52 = vpop.permute.xlu1 %1703 }
  0x98   : >> { %v3036_v7 = vunpack.i.h.bf16 %v2388_v51  ;;  %v3038_v10 = vunpack.i.l.bf16 %v2388_v51  ;;  %v1706_v0 = vunpack.i.h.bf16 %v2390_v52 }
  0x9a   : >> { %v380_v19 = vsel %vm242_vm0, %v3036_v7, %v367_v6  ;;  %v346_v20 = vsel %vm242_vm0, %v3038_v10, %v333_v63 }
  0x9b   : >> { %v2392_v53 = vpop.permute.xlu0 %1708  ;;  %v2394_v56 = vpop.permute.xlu1 %1713 }
  0x9f   : >> { %v2396_v57 = vpop.permute.xlu0 %1718  ;;  %v2398_v58 = vpop.permute.xlu1 %1723 }
  0xa0   : >> { %v3035_v33 = vunpack.i.l.bf16 %v2396_v57 }
  0xa2   : >> { %v414_v37 = vsel %vm242_vm0, %v3035_v33, %v401_v32  ;;  %v1690_v33 = vunpack.i.l.bf16 %v2380_v46 }
  0xa3   : >> { %v2400_v59 = vpop.permute.xlu0 %1728  ;;  %v2402_v60 = vpop.permute.xlu1 %1733 }
  0xa7   : >> { %v2404_v61 = vpop.permute.xlu0 %1738  ;;  %v2406_v62 = vpop.permute.xlu1 %1743 }
  0xab   : >> { %v1749_v11 = vpop.permute.xlu0 %1748  ;;  %v1754_v12 = vpop.permute.xlu1 %1753 }
  0xac   : >> { %v1751_v13 = vunpack.i.h.bf16 %v1749_v11  ;;  %v1750_v15 = vunpack.i.l.bf16 %v1749_v11  ;;  %v1756_v16 = vunpack.i.h.bf16 %v1754_v12  ;;  %v1755_v18 = vunpack.i.l.bf16 %v1754_v12 }
  0xad   : >> { %v1685_v12 = vunpack.i.l.bf16 %v2384_v48 }
  0xae   : >> { %v347_v21 = vsel %vm244_vm1, %v346_v20, %v1750_v15  ;;  %v381_v22 = vsel %vm244_vm1, %v380_v19, %v1751_v13  ;;  %v265_v13 = vrot.slane %v2189_v4, 6  ;;  %v3037_v19 = vunpack.i.h.bf16 %v2400_v59 }
  0xaf   : >> { %v1922_v24 = vpack.i.bf16 %v1756_v16, %v381_v22  ;;  %v1917_v25 = vpack.i.bf16 %v1755_v18, %v347_v21  ;;  %v1759_v26 = vpop.permute.xlu0 %1758  ;;  %v2420_v27 = vpop.permute.xlu1 %1763  ;;  %v435_v18 = vrot.slane %v2236_v43, 6  ;;  %v3039_v20 = vunpack.i.l.bf16 %v2400_v59 }
  0xb0   : >> { %v1760_v34 = vunpack.i.l.bf16 %v1759_v26  ;;  %v1705_v21 = vunpack.i.l.bf16 %v2390_v52 }
  0xb1   : >> { %1918 = vrot.lane.b32.xlu1 %v1917_v25, %s2088_s5  ;;  %1923 = vrot.lane.b32.xlu0 %v1922_v24, %s2089_s6  ;;  %v1761_v24 = vunpack.i.h.bf16 %v1759_v26  ;;  %v1695_v26 = vunpack.i.l.bf16 %v2386_v50  ;;  %v448_v6 = vsel %vm242_vm0, %v3037_v19, %v435_v18  ;;  %v3053_v18 = vrot.slane %v2189_v4, 7 }
  0xb2   : >> { %v415_v40 = vsel %vm244_vm1, %v414_v37, %v1760_v34  ;;  %v1691_v34 = vunpack.i.h.bf16 %v2380_v46  ;;  %v1681_v37 = vunpack.i.h.bf16 %v2382_v47 }
  0xb3   : >> { %v2426_v35 = vpop.permute.xlu0 %1768  ;;  %v2428_v36 = vpop.permute.xlu1 %1773 }
  0xb4   : >> { %v1770_v38 = vunpack.i.l.bf16 %v2426_v35  ;;  %v1775_v32 = vunpack.i.l.bf16 %v2428_v36  ;;  %v377_v7 = vsel %vm236_vm3, %v1681_v37, %v356_v42  ;;  %v341_v42 = vsel %vm232_vm2, %v2189_v4, %v1685_v12 }
  0xb5   : >> { %v1715_v12 = vunpack.i.l.bf16 %v2394_v56 }
  0xb6   : >> { %v1927_v63 = vpack.i.bf16 %v1770_v38, %v415_v40  ;;  %v278_v40 = vsel %vm242_vm0, %v3039_v20, %v265_v13  ;;  %v1686_v38 = vunpack.i.h.bf16 %v2384_v48  ;;  %v449_v44 = vsel %vm244_vm1, %v448_v6, %v1775_v32 }
  0xb7   : >> { %v2443_v15 = vpop.permute.xlu0 %1778  ;;  %v2445_v16 = vpop.permute.xlu1 %1783  ;;  %v279_v22 = vsel %vm244_vm1, %v278_v40, %v1761_v24  ;;  %v375_v13 = vsel %vm232_vm2, %v2183_v2, %v1690_v33  ;;  %v3041_v20 = vunpack.i.h.bf16 %v2386_v50  ;;  %v409_v33 = vsel %vm232_vm2, %v2186_v3, %v1705_v21 }
  0xb8   : >> { %1928 = vrot.lane.b32.xlu1 %v1927_v63, %s2090_s7  ;;  %v1680_v63 = vunpack.i.l.bf16 %v2382_v47  ;;  %v378_v24 = vsel %vm238_vm4, %v377_v7, %v1691_v34  ;;  %v3048_v32 = vunpack.i.l.bf16 %v2388_v51  ;;  %v3050_v3 = vrot.slane %v2212_v23, 7 }
  0xba   : >> { %v343_v6 = vsel %vm236_vm3, %v1680_v63, %v322_v39  ;;  %v275_v7 = vsel %vm236_vm3, %v3041_v20, %v3050_v3  ;;  %v1740_v3 = vunpack.i.l.bf16 %v2404_v61 }
  0xbb   : >> { %v2463_v11 = vpop.permute.xlu0 %1788  ;;  %v2465_v25 = vpop.permute.xlu1 %1793  ;;  %v344_v52 = vsel %vm238_vm4, %v343_v6, %v1686_v38  ;;  %v1710_v6 = vunpack.i.l.bf16 %v2392_v53 }
  0xbc   : >> { %v1791_v46 = vunpack.i.h.bf16 %v2463_v11  ;;  %v1795_v47 = vunpack.i.l.bf16 %v2465_v25 }
  0xbe   : >> { %v1932_v19 = vpack.i.bf16 %v1791_v46, %v279_v22  ;;  %v1937_v10 = vpack.i.bf16 %v1795_v47, %v449_v44  ;;  %v411_v22 = vsel %vm236_vm3, %v1695_v26, %v390_v45  ;;  %v342_v46 = vsel %vm234_vm5, %v341_v42, %v1680_v63 }
  0xbf   : >> { %v2485_v48 = vpop.permute.xlu0 %1798  ;;  %v2487_v1 = vpop.permute.xlu1 %1803  ;;  %v412_v21 = vsel %vm238_vm4, %v411_v22, %v1706_v0  ;;  %v376_v47 = vsel %vm234_vm5, %v375_v13, %v1681_v37  ;;  %v273_v37 = vsel %vm232_vm2, %v2196_v9, %v1715_v12  ;;  %v1721_v63 = vunpack.i.h.bf16 %v2396_v57 }
  0xc0   : >> { %1938 = vrot.lane.b32.xlu1 %v1937_v10, %s2091_s8  ;;  %1933 = vrot.lane.b32.xlu0 %v1932_v19, %s2092_s9  ;;  %v2506_v10 = vsel %vm240_vm6, %v344_v52, %v3048_v32  ;;  %v3049_v19 = vunpack.i.h.bf16 %v2388_v51  ;;  %v1711_v51 = vunpack.i.h.bf16 %v2392_v53  ;;  %v1716_v52 = vunpack.i.h.bf16 %v2394_v56 }
  0xc1   : >> { %v1786_v32 = vunpack.i.h.bf16 %v2445_v16  ;;  %v1800_v0 = vunpack.i.l.bf16 %v2485_v48  ;;  %v1952_v22 = vpack.i.bf16 %v2506_v10, %v342_v46  ;;  %v1746_v13 = vunpack.i.h.bf16 %v2406_v62 }
  0xc2   : >> { %v2511_v38 = vsel %vm240_vm6, %v378_v24, %v3049_v19  ;;  %v2529_v24 = vsel %vm234_vm5, %v409_v33, %v1695_v26  ;;  %v1745_v56 = vunpack.i.l.bf16 %v2406_v62  ;;  %v1726_v26 = vunpack.i.h.bf16 %v2398_v58 }
  0xc3   : >> { %v2519_v34 = vpop.permute.xlu0 %1808  ;;  %v2521_v40 = vpop.permute.xlu1 %1813  ;;  %v1957_v19 = vpack.i.bf16 %v2511_v38, %v376_v47  ;;  %v1725_v42 = vunpack.i.l.bf16 %v2398_v58  ;;  %v1741_v33 = vunpack.i.h.bf16 %v2404_v61  ;;  %v3051_v9 = vrot.slane %v2278_v17, 6 }
  0xc4   : >> { %v3052_v46 = vrot.slane %v2183_v2, 6  ;;  %v1736_v45 = vunpack.i.h.bf16 %v2402_v60  ;;  %v1735_v61 = vunpack.i.l.bf16 %v2402_v60  ;;  %v309_v2 = vsel %vm236_vm3, %v1711_v51, %v3053_v18 }
  0xc5   : >> { %v482_v12 = vsel %vm242_vm0, %v1746_v13, %v3051_v9  ;;  %v3054_v9 = vrot.slane %v2221_v30, 7  ;;  %v276_v28 = vsel %vm238_vm4, %v275_v7, %v1716_v52  ;;  %v3055_v60 = vrot.slane %v2236_v43, 7 }
  0xc6   : >> { %v312_v62 = vsel %vm242_vm0, %v1745_v56, %v3052_v46  ;;  %v483_v44 = vsel %vm244_vm1, %v482_v12, %v1800_v0  ;;  %v443_v0 = vsel %vm232_vm2, %v2203_v14, %v1725_v42  ;;  %v3056_v18 = vunpack.i.h.bf16 %v2386_v50 }
  0xc7   : >> { %v2544_v10 = vpop.permute.xlu0 %1818  ;;  %v2546_v38 = vpop.permute.xlu1 %1823  ;;  %v313_v39 = vsel %vm244_vm1, %v312_v62, %v1786_v32  ;;  %v445_v46 = vsel %vm236_vm3, %v1710_v6, %v3054_v9  ;;  %v479_v32 = vsel %vm236_vm3, %v1721_v63, %v3055_v60  ;;  %v477_v7 = vsel %vm232_vm2, %v2221_v30, %v1740_v3 }
  0xc8   : >> { %v1821_v47 = vunpack.i.h.bf16 %v2544_v10  ;;  %v1825_v58 = vunpack.i.l.bf16 %v2546_v38  ;;  %v274_v62 = vsel %vm234_vm5, %v273_v37, %v3056_v18  ;;  %v730_v14 = vrot.slane %v2332_v5, 7 }
  0xc9   : >> { %v310_v52 = vsel %vm238_vm4, %v309_v2, %v1736_v45  ;;  %v307_v50 = vsel %vm232_vm2, %v2212_v23, %v1735_v61  ;;  %v3057_v37 = vunpack.i.l.bf16 %v2400_v59  ;;  %v3058_v42 = vunpack.i.l.bf16 %v2396_v57 }
  0xca   : >> { %v1942_v20 = vpack.i.bf16 %v1821_v47, %v313_v39  ;;  %v1947_v31 = vpack.i.bf16 %v1825_v58, %v483_v44  ;;  %v446_v39 = vsel %vm238_vm4, %v445_v46, %v1726_v26  ;;  %v480_v44 = vsel %vm238_vm4, %v479_v32, %v1741_v33 }
  0xcb   : >> { %v2574_v4 = vpop.permute.xlu0 %1828  ;;  %v2576_v12 = vpop.permute.xlu1 %1833  ;;  %v277_v26 = vsel %vm240_vm6, %v276_v28, %v3057_v37  ;;  %v413_v30 = vsel %vm240_vm6, %v412_v21, %v3058_v42  ;;  %v311_v33 = vsel %vm240_vm6, %v310_v52, %v1745_v56  ;;  %v3059_v3 = vunpack.i.h.bf16 %v2400_v59 }
  0xcc   : >> { %1948 = vrot.lane.b32.xlu1 %v1947_v31, %s2093_s10  ;;  %1943 = vrot.lane.b32.xlu0 %v1942_v20, %s2094_s11  ;;  %v1776_v31 = vunpack.i.h.bf16 %v2428_v36  ;;  %v444_v20 = vsel %vm234_vm5, %v443_v0, %v1710_v6  ;;  %v1766_v23 = vunpack.i.h.bf16 %v2420_v27  ;;  %v1781_v47 = vunpack.i.h.bf16 %v2443_v15 }
  0xcd   : >> { %v447_v45 = vsel %vm240_vm6, %v446_v39, %v3059_v3  ;;  %v2610_v57 = vsel %vm234_vm5, %v477_v7, %v1721_v63  ;;  %v2613_v36 = vsel %vm240_vm6, %v480_v44, %v1746_v13  ;;  %v1765_v21 = vunpack.i.l.bf16 %v2420_v27 }
  0xce   : >> { %v1967_v59 = vpack.i.bf16 %v277_v26, %v274_v62  ;;  %v1962_v6 = vpack.i.bf16 %v413_v30, %v2529_v24  ;;  %v308_v56 = vsel %vm234_vm5, %v307_v50, %v1711_v51  ;;  %v1771_v61 = vunpack.i.h.bf16 %v2426_v35 }
  0xcf   : >> { %v2605_v58 = vpop.permute.xlu0 %1838  ;;  %v2607_v28 = vpop.permute.xlu1 %1843  ;;  %v1780_v63 = vunpack.i.l.bf16 %v2443_v15  ;;  %v1977_v2 = vpack.i.bf16 %v311_v33, %v308_v56  ;;  %v1972_v13 = vpack.i.bf16 %v447_v45, %v444_v20  ;;  %v613_v27 = vsel %vm232_vm2, %v2249_v54, %v1776_v31 }
  0xd0   : >> { %1953 = vrot.lane.b32.xlu1 %v1952_v22, %s2088_s5  ;;  %1958 = vrot.lane.b32.xlu0 %v1957_v19, %s2089_s6  ;;  %v1785_v22 = vunpack.i.l.bf16 %v2445_v16  ;;  %v1806_v19 = vunpack.i.h.bf16 %v2487_v1  ;;  %v1982_v24 = vpack.i.bf16 %v2613_v36, %v2610_v57  ;;  %v3060_v53 = vrot.slane %v2268_v8, 7  ;;  %s2114_s5 = smov 44   ;;  %s2115_s6 = smov 2  }
  0xd1   : >> { %v647_v9 = vsel %vm232_vm2, %v2252_v55, %v1781_v47  ;;  %v1790_v15 = vunpack.i.l.bf16 %v2463_v11  ;;  %v1811_v46 = vunpack.i.h.bf16 %v2519_v34  ;;  %v3061_v16 = vrot.slane %v2252_v55, 7 }
  0xd2   : >> { %v649_v51 = vsel %vm236_vm3, %v1766_v23, %v3060_v53  ;;  %v1796_v18 = vunpack.i.h.bf16 %v2465_v25  ;;  %v1801_v62 = vunpack.i.h.bf16 %v2485_v48  ;;  %v1810_v39 = vunpack.i.l.bf16 %v2519_v34 }
  0xd3   : >> { %v2637_v60 = vpop.permute.xlu0 %1848  ;;  %v2639_v32 = vpop.permute.xlu1 %1853  ;;  %v615_v0 = vsel %vm236_vm3, %v1765_v21, %v3061_v16  ;;  %v3062_v11 = vrot.slane %v2278_v17, 7  ;;  %v1805_v52 = vunpack.i.l.bf16 %v2487_v1  ;;  %v614_v50 = vsel %vm234_vm5, %v613_v27, %v1765_v21 }
  0xd4   : >> { %1968 = vrot.lane.b32.xlu1 %v1967_v59, %s2092_s9  ;;  %1963 = vrot.lane.b32.xlu0 %v1962_v6, %s2090_s7  ;;  %v616_v7 = vsel %vm238_vm4, %v615_v0, %v1780_v63  ;;  %v650_v48 = vsel %vm238_vm4, %v649_v51, %v1785_v22  ;;  %v681_v37 = vsel %vm232_vm2, %v2268_v8, %v1806_v19  ;;  %v1815_v26 = vunpack.i.l.bf16 %v2521_v40  ;;  %s2116_s7 = smov 120   ;;  %s2118_s9 = smov 86  }
  0xd5   : >> { %v513_v44 = vsel %vm236_vm3, %v1771_v61, %v3062_v11  ;;  %v648_v42 = vsel %vm234_vm5, %v647_v9, %v1766_v23  ;;  %v3063_v30 = vrot.slane %v2293_v29, 7  ;;  %v1820_v33 = vunpack.i.l.bf16 %v2544_v10 }
  0xd6   : >> { %v1836_v20 = vunpack.i.h.bf16 %v2576_v12  ;;  %v651_v45 = vsel %vm240_vm6, %v650_v48, %v1811_v46  ;;  %v3064_v47 = vrot.slane %v2306_v41, 7  ;;  %v511_v57 = vsel %vm232_vm2, %v2236_v43, %v1801_v62 }
  0xd7   : >> { %v683_v31 = vsel %vm236_vm3, %v1790_v15, %v3063_v30  ;;  %v2667_v1 = vpop.permute.xlu0 %1858  ;;  %v2669_v3 = vpop.permute.xlu1 %1863  ;;  %v1826_v10 = vunpack.i.h.bf16 %v2546_v38  ;;  %v617_v36 = vsel %vm240_vm6, %v616_v7, %v1810_v39  ;;  %v514_v21 = vsel %vm238_vm4, %v513_v44, %v1805_v52 }
  0xd8   : >> { %v547_v23 = vsel %vm236_vm3, %v1796_v18, %v3064_v47  ;;  %1978 = vrot.lane.b32.xlu1 %v1977_v2, %s2094_s11  ;;  %1973 = vrot.lane.b32.xlu0 %v1972_v13, %s2091_s8  ;;  %v1831_v59 = vunpack.i.h.bf16 %v2574_v4  ;;  %v1845_v6 = vunpack.i.l.bf16 %v2607_v28  ;;  %v682_v56 = vsel %vm234_vm5, %v681_v37, %v1790_v15  ;;  %s2117_s8 = smov 52   ;;  %s2120_s11 = smov 36  }
  0xd9   : >> { %v1816_v43 = vunpack.i.h.bf16 %v2521_v40  ;;  %v684_v63 = vsel %vm238_vm4, %v683_v31, %v1815_v26  ;;  %v1840_v2 = vunpack.i.l.bf16 %v2605_v58  ;;  %v1992_v27 = vpack.i.bf16 %v651_v45, %v648_v42 }
  0xda   : >> { %v3065_v13 = vrot.slane %v2317_v49, 7  ;;  %v1855_v19 = vunpack.i.l.bf16 %v2639_v32  ;;  %v685_v9 = vsel %vm240_vm6, %v684_v63, %v1836_v20  ;;  %v1987_v40 = vpack.i.bf16 %v617_v36, %v614_v50 }
  0xdb   : >> { %v2698_v53 = vpop.permute.xlu0 %1868  ;;  %v2700_v51 = vpop.permute.xlu1 %1873  ;;  %v1835_v15 = vunpack.i.l.bf16 %v2576_v12  ;;  %v1851_v16 = vunpack.i.h.bf16 %v2637_v60  ;;  %v1860_v0 = vunpack.i.l.bf16 %v2667_v1  ;;  %v515_v62 = vsel %vm240_vm6, %v514_v21, %v1826_v10 }
  0xdc   : >> { %v717_v22 = vsel %vm236_vm3, %v1820_v33, %v3065_v13  ;;  %1993 = vrot.lane.b32.xlu1 %v1992_v27, %s2095_s13  ;;  %1983 = vrot.lane.b32.xlu0 %v1982_v24, %s2093_s10  ;;  %v715_v11 = vsel %vm232_vm2, %v2293_v29, %v1831_v59  ;;  %v1830_v44 = vunpack.i.l.bf16 %v2574_v4  ;;  %v751_v7 = vsel %vm236_vm3, %v1845_v6, %v730_v14  ;;  %s2119_s10 = smov 104  }
  0xdd   : >> { %v1841_v52 = vunpack.i.h.bf16 %v2605_v58  ;;  %v718_v50 = vsel %vm238_vm4, %v717_v22, %v1840_v2  ;;  %v1846_v48 = vunpack.i.h.bf16 %v2607_v28  ;;  %v2002_v24 = vpack.i.bf16 %v685_v9, %v682_v56 }
  0xde   : >> { %v2096_v37 = vmov 0.0   ;;  %v1850_v26 = vunpack.i.l.bf16 %v2637_v60  ;;  %v1865_v4 = vunpack.i.l.bf16 %v2669_v3  ;;  %v719_v14 = vsel %vm240_vm6, %v718_v50, %v1855_v19 }
  0xdf   : >> { %1143 = vmatprep.mubr.f32.mxu0 %v2096_v37  ;;  %1214 = vmatprep.mubr.f32.mxu1 %v2096_v37  ;;  %v2726_v42 = vpop.permute.xlu0 %1878  ;;  %v2728_v30 = vpop.permute.xlu1 %1883  ;;  %v512_v58 = vsel %vm234_vm5, %v511_v57, %v1771_v61  ;;  %v639_v31 = vrot.slane %v2293_v29, 6  ;;  %v3066_v45 = vrot.slane %v2249_v54, 7  ;;  %v749_v47 = vsel %vm232_vm2, %v2317_v49, %v1851_v16 }
  0xe0   : >> { %v752_v36 = vsel %vm238_vm4, %v751_v7, %v1860_v0  ;;  %2003 = vrot.lane.b32.xlu1 %v2002_v24, %s2097_s14  ;;  %1988 = vrot.lane.b32.xlu0 %v1987_v40, %s2098_s15  ;;  %v545_v35 = vsel %vm232_vm2, %v2278_v17, %v1816_v43  ;;  %v548_v29 = vsel %vm238_vm4, %v547_v23, %v1830_v44  ;;  %v1856_v59 = vunpack.i.h.bf16 %v2639_v32 }
  0xe1   : >> { %v581_v60 = vsel %vm236_vm3, %v1835_v15, %v3066_v45  ;;  %v716_v61 = vsel %vm234_vm5, %v715_v11, %v1820_v33  ;;  %v1997_v57 = vpack.i.bf16 %v515_v62, %v512_v58  ;;  %v579_v21 = vsel %vm232_vm2, %v2306_v41, %v1841_v52  ;;  %v3067_v58 = vld [vmem:[#allocation4_spill] sm:$0xff] }
  0xe2   : >> { %v2012_v56 = vpack.i.bf16 %v719_v14, %v716_v61  ;;  %v549_v63 = vsel %vm240_vm6, %v548_v29, %v1846_v48  ;;  %v582_v2 = vsel %vm238_vm4, %v581_v60, %v1850_v26  ;;  %v1870_v27 = vunpack.i.l.bf16 %v2698_v53 }
  0xe3   : >> { %v2757_v17 = vpop.permute.xlu0 %1888  ;;  %v2759_v23 = vpop.permute.xlu1 %1893  ;;  %v750_v33 = vsel %vm234_vm5, %v749_v47, %v1845_v6  ;;  %v753_v43 = vsel %vm240_vm6, %v752_v36, %v1865_v4  ;;  %v605_v13 = vrot.slane %v2268_v8, 6  ;;  %v546_v22 = vsel %vm234_vm5, %v545_v35, %v1796_v18 }
  0xe4   : >> { %2013 = vrot.lane.b32.xlu1 %v2012_v56, %s2099_s16  ;;  %1998 = vrot.lane.b32.xlu0 %v1997_v57, %s2100_s17  ;;  %v652_v6 = vsel %vm242_vm0, %v1811_v46, %v639_v31  ;;  %v673_v9 = vrot.slane %v2317_v49, 6  ;;  %v2007_v40 = vpack.i.bf16 %v549_v63, %v546_v22  ;;  %v580_v16 = vsel %vm234_vm5, %v579_v21, %v1835_v15 }
  0xe5   : >> { %v1861_v8 = vunpack.i.h.bf16 %v2667_v1  ;;  %v1875_v0 = vunpack.i.l.bf16 %v2700_v51  ;;  %v2022_v62 = vpack.i.bf16 %v753_v43, %v750_v33  ;;  %v583_v25 = vsel %vm240_vm6, %v582_v2, %v1856_v59 }
  0xe6   : >> { %v653_v18 = vsel %vm244_vm1, %v652_v6, %v1870_v27  ;;  %v1880_v11 = vunpack.i.l.bf16 %v2726_v42  ;;  %v503_v49 = vrot.slane %v2306_v41, 6  ;;  %v707_v15 = vrot.slane %v2332_v5, 6 }
  0xe7   : >> { %v1899_v44 = vpop.permute.xlu0 %1898  ;;  %v2783_v46 = vpop.permute.xlu1 %1903  ;;  %v618_v52 = vsel %vm242_vm0, %v1810_v39, %v605_v13  ;;  %v686_v50 = vsel %vm242_vm0, %v1836_v20, %v673_v9  ;;  %v1866_v41 = vunpack.i.h.bf16 %v2669_v3  ;;  %v2017_v24 = vpack.i.bf16 %v583_v25, %v580_v16  ;;  %v3068_v20 = vld [vmem:[#allocation5_spill] sm:$0xff] }
  0xe8   : >> { %v1901_v7 = vunpack.i.h.bf16 %v1899_v44  ;;  %2023 = vrot.lane.b32.xlu1 %v2022_v62, %s2087_s4  ;;  %v1906_v1 = vunpack.i.h.bf16 %v2783_v46  ;;  %2008 = vrot.lane.b32.xlu0 %v2007_v40, %s2101_s18  ;;  %v619_v5 = vsel %vm244_vm1, %v618_v52, %v1861_v8  ;;  %v2032_v26 = vpack.i.bf16 %v1875_v0, %v653_v18  ;;  %v2068_v8 = vld [vmem:[%s2180_s29 + $0x4] sm:$0x7]  ;;  %v2069_v18 = vld [vmem:[%s2180_s29 + $0x8] sm:$0x7]  ;;  %s2111_s29 = smov 60  }
  0xe9   : >> { %v1885_v14 = vunpack.i.l.bf16 %v2728_v30  ;;  %v1871_v45 = vunpack.i.h.bf16 %v2698_v53  ;;  %v687_v34 = vsel %vm244_vm1, %v686_v50, %v1880_v11  ;;  %v1890_v39 = vunpack.i.l.bf16 %v2757_v17 }
  0xea   : >> { %v233_v31 = vsel %vm232_vm2, %v3067_v58, %v1901_v7  ;;  %v741_v60 = vrot.slane %v3068_v20, 6  ;;  %v537_v47 = vrot.slane %v2249_v54, 6  ;;  %v720_v36 = vsel %vm242_vm0, %v1855_v19, %v707_v15 }
  0xeb   : >> { %v2807_v12 = vsel %vm234_vm5, %v233_v31, %v1906_v1  ;;  %v516_v53 = vsel %vm242_vm0, %v1826_v10, %v503_v49  ;;  %v2027_v35 = vpack.i.bf16 %v1866_v41, %v619_v5  ;;  %v1876_v29 = vunpack.i.h.bf16 %v2700_v51  ;;  %v1914_v13 = vpop.permute.xlu1 %1913  ;;  %v1909_v22 = vpop.permute.xlu0 %1908 }
  0xec   : >> { %2033 = vrot.lane.b32.xlu1 %v2032_v26, %s2095_s13  ;;  %2018 = vrot.lane.b32.xlu0 %v2017_v24, %s2102_s19  ;;  %v2042_v61 = vpack.i.bf16 %v1885_v14, %v687_v34  ;;  %v1895_v57 = vunpack.i.l.bf16 %v2759_v23  ;;  %v517_v54 = vsel %vm244_vm1, %v516_v53, %v1871_v45  ;;  %v1881_v21 = vunpack.i.h.bf16 %v2726_v42  ;;  %s2121_s13 = smov 70  }
  0xed   : >> { %v721_v19 = vsel %vm244_vm1, %v720_v36, %v1890_v39  ;;  %v1900_v56 = vunpack.i.l.bf16 %v1899_v44  ;;  %v550_v63 = vsel %vm242_vm0, %v1846_v48, %v537_v47  ;;  %v571_v38 = vrot.slane %v2252_v55, 6 }
  0xee   : >> { %v754_v10 = vsel %vm242_vm0, %v1865_v4, %v741_v60  ;;  %v2037_v51 = vpack.i.bf16 %v1876_v29, %v517_v54  ;;  %v1886_v42 = vunpack.i.h.bf16 %v2728_v30  ;;  %v2052_v2 = vpack.i.bf16 %v1895_v57, %v721_v19 }
  0xef   : >> { %v1905_v27 = vunpack.i.l.bf16 %v2783_v46  ;;  %v551_v28 = vsel %vm244_vm1, %v550_v63, %v1881_v21  ;;  %v1891_v48 = vunpack.i.h.bf16 %v2757_v17  ;;  %v755_v55 = vsel %vm244_vm1, %v754_v10, %v1900_v56 }
  0xf0   : >> { %2043 = vrot.lane.b32.xlu1 %v2042_v61, %s2097_s14  ;;  %2028 = vrot.lane.b32.xlu0 %v2027_v35, %s2098_s15  ;;  %v584_v3 = vsel %vm242_vm0, %v1856_v59, %v571_v38  ;;  %v2047_v4 = vpack.i.bf16 %v1886_v42, %v551_v28  ;;  %v1896_v30 = vunpack.i.h.bf16 %v2759_v23  ;;  %v2103_v17 = vmov 0   ;;  %v3069_v59 = vld [vmem:[#allocation3_spill] sm:$0xff] }
  0xf1   : >> { %v2062_v33 = vpack.i.bf16 %v1905_v27, %v755_v55  ;;  %v585_v43 = vsel %vm244_vm1, %v584_v3, %v1891_v48  ;;  %2067 = vset.pattern.permute.xlu0 %v2103_v17  ;;  %v212_v0 = vrot.slane %v2068_v8, 7  ;;  %v223_v11 = vrot.slane %v2069_v18, 6 }
  0xf2   : >> { %v2057_v32 = vpack.i.bf16 %v1896_v30, %v585_v43  ;;  %v1910_v44 = vunpack.i.l.bf16 %v1909_v22  ;;  %v1915_v15 = vunpack.i.l.bf16 %v1914_v13  ;;  %v1911_v50 = vunpack.i.h.bf16 %v1909_v22 }
  0xf3   : >> { %v237_v49 = vsel %vm236_vm3, %v1906_v1, %v212_v0  ;;  %v1916_v34 = vunpack.i.h.bf16 %v1914_v13  ;;  %vm1061_vm2 = vcmask 220160   ;;  %vm1046_vm3 = vcmask 752640  }
  0xf4   : >> { %2053 = vrot.lane.b32.xlu1 %v2052_v2, %s2099_s16  ;;  %2038 = vrot.lane.b32.xlu0 %v2037_v51, %s2100_s17  ;;  %v243_v58 = vsel %vm242_vm0, %v1915_v15, %v223_v11  ;;  %v239_v46 = vsel %vm238_vm4, %v237_v49, %v1910_v44  ;;  %vm1036_vm0 = vcmask 195584   ;;  %vm1016_vm4 = vcmask 130048  }
  0xf5   : >> { %v245_v53 = vsel %vm244_vm1, %v243_v58, %v1911_v50  ;;  %v241_v61 = vsel %vm240_vm6, %v239_v46, %v1915_v15  ;;  %vm1041_vm1 = vcmask 474112   ;;  %vm1051_vm5 = vcmask 1031168  }
  0xf6   : >> { %vm1021_vm6 = vcmask 408576  }
  0xf8   : >> { %2048 = vrot.lane.b32.xlu0 %v2047_v4, %s2101_s18  ;;  %2063 = vrot.lane.b32.xlu1 %v2062_v33, %s2087_s4  ;;  %s2113_s4 = smov 112  }
  0xfc   : >> { %2058 = vrot.lane.b32.xlu0 %v2057_v32, %s2102_s19 }
 0x100   : >> { %1058 = vperm.xlu0 %2067, %v3069_v59  }
 0x123   : >> { %v2849_v6 = vpop.permute.xlu1 %1918  ;;  %v1924_v23 = vpop.permute.xlu0 %1923 }
 0x124   : >> { %v1920_v7 = vunpack.i.l.bf16 %v2849_v6  ;;  %v1925_v52 = vunpack.i.l.bf16 %v1924_v23  ;;  %v1921_v41 = vunpack.i.h.bf16 %v2849_v6  ;;  %v1926_v24 = vunpack.i.h.bf16 %v1924_v23 }
 0x126   : >> { %v999_v20 = vsel %vm996_vm7, %v1920_v7, %v1925_v52  ;;  %v1000_v47 = vsel %vm996_vm7, %v1921_v41, %v1926_v24 }
 0x12a   : >> { %v1929_v9 = vpop.permute.xlu1 %1928 }
 0x12b   : >> { %v1930_v5 = vunpack.i.l.bf16 %v1929_v9  ;;  %v1931_v31 = vunpack.i.h.bf16 %v1929_v9 }
 0x12d   : >> { %v1004_v36 = vsel %vm1001_vm8, %v999_v20, %v1930_v5  ;;  %v1005_v57 = vsel %vm1001_vm8, %v1000_v47, %v1931_v31 }
 0x132   : >> { %v1939_v40 = vpop.permute.xlu1 %1938  ;;  %v1934_v16 = vpop.permute.xlu0 %1933 }
 0x133   : >> { %v1940_v45 = vunpack.i.l.bf16 %v1939_v40  ;;  %v1941_v1 = vunpack.i.h.bf16 %v1939_v40  ;;  %v1936_v39 = vunpack.i.h.bf16 %v1934_v16  ;;  %v1935_v60 = vunpack.i.l.bf16 %v1934_v16 }
 0x135   : >> { %v1009_v54 = vsel %vm1006_vm9, %v1004_v36, %v1940_v45  ;;  %v1010_v21 = vsel %vm1006_vm9, %v1005_v57, %v1941_v1  ;;  %v985_v19 = vsel %vm981_vm10, %v1916_v34, %v1936_v39  ;;  %v984_v38 = vsel %vm981_vm10, %v245_v53, %v1935_v60 }
 0x13e   : >> { %v2852_v62 = vpop.permute.xlu1 %1948  ;;  %v2854_v25 = vpop.permute.xlu0 %1943 }
 0x13f   : >> { %v1951_v10 = vunpack.i.h.bf16 %v2852_v62  ;;  %v1946_v51 = vunpack.i.h.bf16 %v2854_v25  ;;  %v1945_v42 = vunpack.i.l.bf16 %v2854_v25  ;;  %v1950_v22 = vunpack.i.l.bf16 %v2852_v62 }
 0x141   : >> { %v989_v23 = vsel %vm986_vm11, %v984_v38, %v1945_v42  ;;  %v990_v52 = vsel %vm986_vm11, %v985_v19, %v1946_v51  ;;  %v1014_v58 = vsel %vm1011_vm12, %v1009_v54, %v1950_v22  ;;  %v1015_v31 = vsel %vm1011_vm12, %v1010_v21, %v1951_v10 }
 0x142   : >> { %v1954_v26 = vpop.permute.xlu1 %1953  ;;  %v1959_v14 = vpop.permute.xlu0 %1958  ;;  %v1600_v20 = vpack.c.bf16 %v1015_v31, %v1014_v58  ;;  %v994_v60 = vsel %vm991_vm13, %v989_v23, %v1920_v7  ;;  %v995_v47 = vsel %vm991_vm13, %v990_v52, %v1921_v41  ;;  %v2105_v38 = vmov 0.0|0.0  }
 0x143   : >> { %v1956_v2 = vunpack.i.h.bf16 %v1954_v26  ;;  %v1955_v27 = vunpack.i.l.bf16 %v1954_v26  ;;  %v1961_v28 = vunpack.i.h.bf16 %v1959_v14  ;;  %v1960_v48 = vunpack.i.l.bf16 %v1959_v14 }
 0x144   : >> { %v1603_v54 = vpack.c.bf16 %v995_v47, %v994_v60 }
 0x145   : >> { %v998_v16 = vsel %vm996_vm7, %v1956_v2, %v1961_v28  ;;  %v997_v8 = vsel %vm996_vm7, %v1955_v27, %v1960_v48  ;;  %vm2106_vm7 = vmmov 0  }
 0x146   : >> { %v1969_v35 = vpop.permute.xlu1 %1968  ;;  %v1964_v29 = vpop.permute.xlu0 %1963 }
 0x147   : >> { %v1971_v56 = vunpack.i.h.bf16 %v1969_v35  ;;  %v1970_v63 = vunpack.i.l.bf16 %v1969_v35  ;;  %v1966_v4 = vunpack.i.h.bf16 %v1964_v29  ;;  %v1965_v30 = vunpack.i.l.bf16 %v1964_v29 }
 0x149   : >> { %v982_v17 = vsel %vm981_vm10, %v2807_v12, %v1970_v63  ;;  %v983_v32 = vsel %vm981_vm10, %v241_v61, %v1971_v56  ;;  %v1002_v49 = vsel %vm1001_vm8, %v997_v8, %v1965_v30  ;;  %v1003_v15 = vsel %vm1001_vm8, %v998_v16, %v1966_v4 }
 0x14a   : >> { %v1979_v55 = vpop.permute.xlu1 %1978  ;;  %v1974_v3 = vpop.permute.xlu0 %1973  ;;  %vm1026_vm8 = vcmask 687104   ;;  %vm1293_vm10 = vcmask 274432  }
 0x14b   : >> { %v1981_v33 = vunpack.i.h.bf16 %v1979_v55  ;;  %v1980_v43 = vunpack.i.l.bf16 %v1979_v55  ;;  %v1976_v59 = vunpack.i.h.bf16 %v1974_v3  ;;  %v1975_v13 = vunpack.i.l.bf16 %v1974_v3  ;;  %v3072_v3 = vld [vmem:[#allocation2_spill] sm:$0xff] }
 0x14d   : >> { %v987_v9 = vsel %vm986_vm11, %v982_v17, %v1980_v43  ;;  %v988_v40 = vsel %vm986_vm11, %v983_v32, %v1981_v33  ;;  %v1007_v50 = vsel %vm1006_vm9, %v1002_v49, %v1975_v13  ;;  %v1008_v24 = vsel %vm1006_vm9, %v1003_v15, %v1976_v59 }
 0x14e   : >> { %v1994_v0 = vpop.permute.xlu1 %1993  ;;  %v2890_v25 = vpop.permute.xlu0 %1983  ;;  %v992_v12 = vsel %vm991_vm13, %v987_v9, %v1955_v27  ;;  %v993_v18 = vsel %vm991_vm13, %v988_v40, %v1956_v2  ;;  %vm1031_vm9 = vcmask 965632   ;;  %vm1349_vm11 = vcmask 146432  }
 0x14f   : >> { %v1986_v11 = vunpack.i.h.bf16 %v2890_v25  ;;  %v1985_v44 = vunpack.i.l.bf16 %v2890_v25  ;;  %v1598_v5 = vpack.c.bf16 %v993_v18, %v992_v12  ;;  %v1995_v36 = vunpack.i.l.bf16 %v1994_v0 }
 0x150   : >> { %v1996_v57 = vunpack.i.h.bf16 %v1994_v0  ;;  %vm1382_vm13 = vcmask 80896  }
 0x151   : >> { %v1012_v26 = vsel %vm1011_vm12, %v1007_v50, %v1985_v44  ;;  %v1013_v14 = vsel %vm1011_vm12, %v1008_v24, %v1986_v11  ;;  %vm1316_vm12 = vcmask 211968  }
 0x152   : >> { %v2004_v45 = vpop.permute.xlu1 %2003  ;;  %v2913_v46 = vpop.permute.xlu0 %1988  ;;  %v1596_v34 = vpack.c.bf16 %v1013_v14, %v1012_v26 }
 0x153   : >> { %v1990_v1 = vunpack.i.l.bf16 %v2913_v46  ;;  %v1991_v53 = vunpack.i.h.bf16 %v2913_v46  ;;  %v2005_v35 = vunpack.i.l.bf16 %v2004_v45  ;;  %v2006_v6 = vunpack.i.h.bf16 %v2004_v45 }
 0x154   : >> { %1597 = vmatprep.subr.bf16.mxu0 %v1596_v34 }
 0x155   : >> { %1599 = vmatpush1.bf16.msra.mxu0 %v1598_v5  ;;  %v1037_v7 = vsel %vm1036_vm0, %v1990_v1, %v1995_v36  ;;  %v1038_v41 = vsel %vm1036_vm0, %v1991_v53, %v1996_v57 }
 0x156   : >> { %v2014_v29 = vpop.permute.xlu1 %2013  ;;  %v1999_v61 = vpop.permute.xlu0 %1998  ;;  %1602 = vmatprep.subr.msk.bf16.mxu0 %vm2917_vm15, %v1600_v20  ;;  %v1042_v51 = vsel %vm1041_vm1, %v1037_v7, %v2005_v35  ;;  %v1043_v4 = vsel %vm1041_vm1, %v1038_v41, %v2006_v6 }
 0x157   : >> { %v2015_v21 = vunpack.i.l.bf16 %v2014_v29  ;;  %v2016_v19 = vunpack.i.h.bf16 %v2014_v29  ;;  %v2001_v42 = vunpack.i.h.bf16 %v1999_v61  ;;  %v2000_v2 = vunpack.i.l.bf16 %v1999_v61 }
 0x159   : >> { %1605 = vmatpush1.bf16.msk.msra.mxu0 %vm2917_vm15, %v1603_v54  ;;  %v1047_v30 = vsel %vm1046_vm3, %v1042_v51, %v2015_v21  ;;  %v1048_v43 = vsel %vm1046_vm3, %v1043_v4, %v2016_v19  ;;  %v1017_v23 = vsel %vm1016_vm4, %v1985_v44, %v2000_v2  ;;  %v1018_v9 = vsel %vm1016_vm4, %v1986_v11, %v2001_v42 }
 0x15a   : >> { %v2024_v56 = vpop.permute.xlu1 %2023  ;;  %v2009_v63 = vpop.permute.xlu0 %2008  ;;  %1616 = vmatprep.subr.bf16.mxu0 %v2105_v38 }
 0x15b   : >> { %v2026_v27 = vunpack.i.h.bf16 %v2024_v56  ;;  %v2025_v28 = vunpack.i.l.bf16 %v2024_v56  ;;  %v2011_v48 = vunpack.i.h.bf16 %v2009_v63  ;;  %v2010_v55 = vunpack.i.l.bf16 %v2009_v63 }
 0x15c   : >> { %1541 = vmatmul.mubr.msk.f32.vlgmr.msra.gmra.mrb[0].mxu0 %vm1061_vm2, %v3072_v3 }
 0x15d   : >> { %v1617_v33 = vpack.c.bf16 %v2026_v27, %v2025_v28  ;;  %v1052_v17 = vsel %vm1051_vm5, %v1047_v30, %v2025_v28  ;;  %1593 = vmatprep.mubr.msk.f32.mxu0 %vm2106_vm7, %v2096_v37  ;;  %v1053_v13 = vsel %vm1051_vm5, %v1048_v43, %v2026_v27  ;;  %v1022_v8 = vsel %vm1021_vm6, %v1017_v23, %v2010_v55 }
 0x15e   : >> { %v2034_v32 = vpop.permute.xlu1 %2033  ;;  %v2019_v59 = vpop.permute.xlu0 %2018  ;;  %v1023_v37 = vsel %vm1021_vm6, %v1018_v9, %v2011_v48  ;;  %v1606_v0 = vpack.c.bf16 %v1053_v13, %v1052_v17 }
 0x15f   : >> { %v2021_v40 = vunpack.i.h.bf16 %v2019_v59  ;;  %v2020_v16 = vunpack.i.l.bf16 %v2019_v59  ;;  %1618 = vmatpush3.bf16.msra.mxu0 %v1617_v33  ;;  %v2036_v24 = vunpack.i.h.bf16 %v2034_v32  ;;  %v2035_v5 = vunpack.i.l.bf16 %v2034_v32 }
 0x160   : >> { %1619 = vmatprep.subr.bf16.mxu0 %v2105_v38  ;;  %1607 = vmatprep.subr.bf16.mxu1 %v1606_v0 }
 0x161   : >> { %v1027_v12 = vsel %vm1026_vm8, %v1022_v8, %v2020_v16  ;;  %v1028_v18 = vsel %vm1026_vm8, %v1023_v37, %v2021_v40 }
 0x162   : >> { %v2044_v49 = vpop.permute.xlu1 %2043  ;;  %v2029_v44 = vpop.permute.xlu0 %2028  ;;  %v1032_v25 = vsel %vm1031_vm9, %v1027_v12, %v1990_v1  ;;  %v1033_v11 = vsel %vm1031_vm9, %v1028_v18, %v1991_v53 }
 0x163   : >> { %v2031_v15 = vunpack.i.h.bf16 %v2029_v44  ;;  %v2030_v52 = vunpack.i.l.bf16 %v2029_v44  ;;  %v1608_v50 = vpack.c.bf16 %v1033_v11, %v1032_v25  ;;  %v2046_v26 = vunpack.i.h.bf16 %v2044_v49 }
 0x164   : >> { %v2045_v14 = vunpack.i.l.bf16 %v2044_v49 }
 0x165   : >> { %1609 = vmatpush1.bf16.msra.mxu1 %v1608_v50  ;;  %v1040_v45 = vsel %vm1036_vm0, %v2031_v15, %v2036_v24  ;;  %v1039_v34 = vsel %vm1036_vm0, %v2030_v52, %v2035_v5 }
 0x166   : >> { %v2054_v58 = vpop.permute.xlu1 %2053  ;;  %v2039_v31 = vpop.permute.xlu0 %2038  ;;  %v1044_v1 = vsel %vm1041_vm1, %v1039_v34, %v2045_v14  ;;  %v1045_v60 = vsel %vm1041_vm1, %v1040_v45, %v2046_v26 }
 0x167   : >> { %v2056_v20 = vunpack.i.h.bf16 %v2054_v58  ;;  %v2055_v46 = vunpack.i.l.bf16 %v2054_v58  ;;  %v2041_v53 = vunpack.i.h.bf16 %v2039_v31  ;;  %v2040_v35 = vunpack.i.l.bf16 %v2039_v31 }
 0x169   : >> { %v1049_v57 = vsel %vm1046_vm3, %v1044_v1, %v2055_v46  ;;  %v1050_v7 = vsel %vm1046_vm3, %v1045_v60, %v2056_v20  ;;  %v1020_v38 = vsel %vm1016_vm4, %v1951_v10, %v2041_v53  ;;  %v1019_v51 = vsel %vm1016_vm4, %v1950_v22, %v2040_v35 }
 0x16a   : >> { %v2049_v47 = vpop.permute.xlu0 %2048  ;;  %v2064_v36 = vpop.permute.xlu1 %2063 }
 0x16b   : >> { %v2066_v29 = vunpack.i.h.bf16 %v2064_v36  ;;  %v2065_v61 = vunpack.i.l.bf16 %v2064_v36  ;;  %v2051_v54 = vunpack.i.h.bf16 %v2049_v47  ;;  %v2050_v6 = vunpack.i.l.bf16 %v2049_v47 }
 0x16d   : >> { %v1055_v21 = vsel %vm1051_vm5, %v1050_v7, %v2066_v29  ;;  %v1054_v41 = vsel %vm1051_vm5, %v1049_v57, %v2065_v61  ;;  %v1620_v56 = vpack.c.bf16 %v2066_v29, %v2065_v61  ;;  %v1024_v27 = vsel %vm1021_vm6, %v1019_v51, %v2050_v6 }
 0x16e   : >> { %v1610_v19 = vpack.c.bf16 %v1055_v21, %v1054_v41  ;;  %v2059_v63 = vpop.permute.xlu0 %2058  ;;  %v1025_v28 = vsel %vm1021_vm6, %v1020_v38, %v2051_v54 }
 0x16f   : >> { %v2061_v42 = vunpack.i.h.bf16 %v2059_v63  ;;  %v2060_v2 = vunpack.i.l.bf16 %v2059_v63  ;;  %1622 = vmatpush3.bf16.msk.msra.mxu0 %vm2917_vm15, %v1620_v56 }
 0x170   : >> { %1612 = vmatprep.subr.msk.bf16.mxu1 %vm2917_vm15, %v1610_v19 }
 0x171   : >> { %v1029_v10 = vsel %vm1026_vm8, %v1024_v27, %v2060_v2  ;;  %v1030_v62 = vsel %vm1026_vm8, %v1025_v28, %v2061_v42 }
 0x172   : >> { %v1034_v48 = vsel %vm1031_vm9, %v1029_v10, %v2030_v52  ;;  %v1035_v22 = vsel %vm1031_vm9, %v1030_v62, %v2031_v15  ;;  %1594 = vmatmul.mubr.msk.f32.vlgmr.msra.gmra.mrb[2].mxu0 %vm1061_vm2, %v3072_v3 }
 0x173   : >> { %v1613_v55 = vpack.c.bf16 %v1035_v22, %v1034_v48 }
 0x175   : >> { %1615 = vmatpush1.bf16.msk.msra.mxu1 %vm2917_vm15, %v1613_v55 }
 0x178   : >> { %1544 = vmatmul.mubr.msk.f32.vlgmr.msra.gmra.mrb[0].mxu1 %vm1061_vm2, %v3072_v3 }
 0x17f   : >> { %v1059_v4 = vpop.permute.xlu0 %1058 }
 0x22f   : >> { %v1145_v30 = vpop.f32.mrb[0].mxu0 }
 0x230   : >> { %v1147_v33 = vpop.f32.mrb[1].mxu0  ;;  %v1146_v43 = vadd.f32 %v1145_v30, %v1059_v4 }
 0x231   : >> { %v1148_v23 = vadd.f32 %v1147_v33, %v1059_v4 }
 0x232   : >> { %1294 = vst.msk [vmem:[%s2991_s21] sm:$0x1f] %vm1293_vm10, %v1146_v43  ;;  %1312 = vrot.lane.b32.xlu1 %v1146_v43, %s2107_s23 }
 0x245   : >> { %v1287_v17 = vpop.f32.mrb[2].mxu0 }
 0x246   : >> { %v1595_v32 = vpop.f32.mrb[3].mxu0  ;;  %v1288_v40 = vadd.f32 %v1287_v17, %v1059_v4 }
 0x24b   : >> { %v1216_v39 = vpop.f32.mrb[0].mxu1 }
 0x24c   : >> { %v1217_v59 = vadd.f32 %v1216_v39, %v1059_v4  ;;  %v1218_v13 = vpop.f32.mrb[1].mxu1 }
 0x24d   : >> { %v1219_v9 = vadd.f32 %v1218_v13, %v1059_v4 }
 0x24e   : >> { %1378 = vrot.lane.b32.xlu0 %v1217_v59, %s2108_s24  ;;  %1347 = vrot.lane.b32.xlu1 %v1217_v59, %s2109_s27 }
 0x252   : >> { %1297 = vrot.lane.b32.xlu0 %v1146_v43, %s2110_s28  ;;  %1304 = vrot.lane.b32.xlu1 %v1146_v43, %s2111_s29 }
 0x256   : >> { %1363 = vrot.lane.b32.xlu0 %v1217_v59, %s2112_s30  ;;  %1356 = vrot.lane.b32.xlu1 %v1217_v59, %s2113_s4 }
 0x25a   : >> { %1345 = vrot.lane.b32.xlu0 %v1148_v23, %s2109_s27  ;;  %1370 = vrot.lane.b32.xlu1 %v1217_v59, %s2114_s5 }
 0x25e   : >> { %1411 = vrot.lane.b32.xlu0 %v1219_v9, %s2115_s6  ;;  %1314 = vrot.lane.b32.xlu1 %v1148_v23, %s2107_s23 }
 0x262   : >> { %1323 = vrot.lane.b32.xlu0 %v1148_v23, %s2116_s7  ;;  %1380 = vrot.lane.b32.xlu1 %v1219_v9, %s2108_s24 }
 0x266   : >> { %1337 = vrot.lane.b32.xlu0 %v1148_v23, %s2117_s8  ;;  %1330 = vrot.lane.b32.xlu1 %v1148_v23, %s2118_s9 }
 0x26a   : >> { %1389 = vrot.lane.b32.xlu0 %v1219_v9, %s2119_s10  ;;  %1413 = vrot.lane.b32.xlu1 %v1288_v40, %s2115_s6 }
 0x26e   : >> { %1403 = vrot.lane.b32.xlu0 %v1219_v9, %s2120_s11  ;;  %1396 = vrot.lane.b32.xlu1 %v1219_v9, %s2121_s13 }
 0x2a4   : >> { %v1313_v16 = vpop.permute.xlu1 %1312 }
 0x2c0   : >> { %v1379_v8 = vpop.permute.xlu0 %1378  ;;  %v1348_v37 = vpop.permute.xlu1 %1347 }
 0x2c4   : >> { %v1298_v0 = vpop.permute.xlu0 %1297  ;;  %v1305_v12 = vpop.permute.xlu1 %1304 }
 0x2c5   : >> { %1549 = vst.msk [vmem:[%s2991_s21 + $0x8] sm:$0x1f] %vm1293_vm10, %v1298_v0  ;;  %1551 = vst.msk [vmem:[%s2991_s21 + $0x10] sm:$0x1f] %vm1293_vm10, %v1305_v12 }
 0x2c8   : >> { %v1364_v18 = vpop.permute.xlu0 %1363  ;;  %v1357_v49 = vpop.permute.xlu1 %1356 }
 0x2c9   : >> { %1565 = vst.msk [vmem:[%s2991_s21 + $0x48] sm:$0x1f] %vm1293_vm10, %v1364_v18  ;;  %1563 = vst.msk [vmem:[%s2991_s21 + $0x40] sm:$0x1f] %vm1293_vm10, %v1357_v49 }
 0x2cc   : >> { %v1346_v44 = vpop.permute.xlu0 %1345  ;;  %v1371_v25 = vpop.permute.xlu1 %1370 }
 0x2cd   : >> { %v1350_v11 = vsel %vm1349_vm11, %v1346_v44, %v1348_v37  ;;  %1567 = vst.msk [vmem:[%s2991_s21 + $0x50] sm:$0x1f] %vm1293_vm10, %v1371_v25 }
 0x2ce   : >> { %1561 = vst.msk [vmem:[%s2991_s21 + $0x38] sm:$0x1f] %vm1293_vm10, %v1350_v11 }
 0x2d0   : >> { %v1412_v15 = vpop.permute.xlu0 %1411  ;;  %v1315_v52 = vpop.permute.xlu1 %1314 }
 0x2d1   : >> { %v1317_v50 = vsel %vm1316_vm12, %v1313_v16, %v1315_v52 }
 0x2d2   : >> { %1553 = vst.msk [vmem:[%s2991_s21 + $0x18] sm:$0x1f] %vm1293_vm10, %v1317_v50 }
 0x2d4   : >> { %v1324_v24 = vpop.permute.xlu0 %1323  ;;  %v1381_v5 = vpop.permute.xlu1 %1380 }
 0x2d5   : >> { %1555 = vst.msk [vmem:[%s2991_s21 + $0x20] sm:$0x1f] %vm1293_vm10, %v1324_v24  ;;  %v1383_v26 = vsel %vm1382_vm13, %v1379_v8, %v1381_v5 }
 0x2d6   : >> { %1569 = vst.msk [vmem:[%s2991_s21 + $0x58] sm:$0x1f] %vm1293_vm10, %v1383_v26 }
 0x2d8   : >> { %v1338_v14 = vpop.permute.xlu0 %1337  ;;  %v1331_v58 = vpop.permute.xlu1 %1330 }
 0x2d9   : >> { %1559 = vst.msk [vmem:[%s2991_s21 + $0x30] sm:$0x1f] %vm1293_vm10, %v1338_v14  ;;  %1557 = vst.msk [vmem:[%s2991_s21 + $0x28] sm:$0x1f] %vm1293_vm10, %v1331_v58 }
 0x2db   : > { %177 = sbr.rel (!%p175_p5) target bundleno = 18 (0x12), region = 86 }
 0x2dc   : >> { %v1390_v31 = vpop.permute.xlu0 %1389  ;;  %v1414_v45 = vpop.permute.xlu1 %1413 }
 0x2dd   : >> { %1571 = vst.msk [vmem:[%s2991_s21 + $0x60] sm:$0x1f] %vm1293_vm10, %v1390_v31  ;;  %v1416_v34 = vsel %vm1415_vm14, %v1412_v15, %v1414_v45 }
 0x2de   : >> { %1577 = vst.msk [vmem:[%s2991_s21 + $0x78] sm:$0x1f] %vm1293_vm10, %v1416_v34 }
 0x2e0   : >> { %v1404_v20 = vpop.permute.xlu0 %1403  ;;  %v1397_v46 = vpop.permute.xlu1 %1396 }
 0x2e1   : >> { %1575 = vst.msk [vmem:[%s2991_s21 + $0x70] sm:$0x1f] %vm1293_vm10, %v1404_v20  ;;  %1573 = vst.msk [vmem:[%s2991_s21 + $0x68] sm:$0x1f] %vm1293_vm10, %v1397_v46 }
 0x2e2 PF: > { %s13_s12 = sadd.s32 1, %s2080_s12  }
 0x2e3   : > { %p10_p6 = scmp.ge.s32.totalorder %s13_s12, 4  }
 0x2e5   :  { %12 = sbr.rel (!%p10_p6) target bundleno = 1 (0x1), region = 97 }

</bundles_post_ra>
